<compile_context>
chip_gen: v6e
topology: v6e:2x2x1
jax: 0.10.0
libtpu: 0.0.40
codegen_flags: <defaults>
</compile_context>

<pallas_src>
import functools

import jax
import jax.numpy as jnp
from jax.experimental import pallas as pl
from jax.experimental.pallas import tpu as pltpu

_BIG = 1.0e9  # z-gate pad value: sigmoid(BIG + bounded) == 1.0 -> identity step


def _sigmoid(x):
    # One EUP push (tanh) instead of exp + reciprocal on the serial critical path.
    return 0.5 * (1.0 + jnp.tanh(0.5 * x))


def _gru_chunk_kernel(gi_ref, whh_hbm_ref, hout_ref, whh_vmem, w_sem,
                      *, tc, hidden, fused, unroll):
    """One grid step == `tc` timesteps of the GRU recurrence for one batch block.

    gi_ref     : (3, tc, Bc, H) bf16  per-gate input projections (precomputed off-path)
    whh_hbm_ref: HBM ref to hidden->gate weights ((H, 3H) if fused else (3, H, H)) bf16
    hout_ref   : (Bc, H) f32    resident output block; doubles as the h carry
    whh_vmem   : VMEM scratch, same shape as whh_hbm_ref (single-buffered weights)
    w_sem      : DMA semaphore for the one-off weight copy
    """
    c = pl.program_id(1)

    @pl.when(c == 0)
    def _():
        # Grid-invariant weights: copy once per batch block into a single-buffered
        # VMEM scratch (no pipeline double-buffer / per-chunk re-DMA).
        cp = pltpu.make_async_copy(whh_hbm_ref, whh_vmem, w_sem)
        cp.start()
        cp.wait()
        hout_ref[...] = jnp.zeros_like(hout_ref)

    mxu_dtype = whh_vmem.dtype
    if fused:
        w_cat = whh_vmem[...]                       # (H, 3H); gate blocks 128-lane aligned
    else:
        w_r, w_z, w_n = whh_vmem[0], whh_vmem[1], whh_vmem[2]

    def step(tt, h):
        h_lo = h.astype(mxu_dtype)
        if fused:
            # Single MXU push/drain per timestep; slices at 128-aligned lane offsets.
            gh = jnp.dot(h_lo, w_cat, preferred_element_type=jnp.float32)
            gh_r = gh[:, :hidden]
            gh_z = gh[:, hidden:2 * hidden]
            gh_n = gh[:, 2 * hidden:]
        else:
            gh_r = jnp.dot(h_lo, w_r, preferred_element_type=jnp.float32)
            gh_z = jnp.dot(h_lo, w_z, preferred_element_type=jnp.float32)
            gh_n = jnp.dot(h_lo, w_n, preferred_element_type=jnp.float32)
        r = _sigmoid(gi_ref[0, tt].astype(jnp.float32) + gh_r)
        z = _sigmoid(gi_ref[1, tt].astype(jnp.float32) + gh_z)
        n = jnp.tanh(gi_ref[2, tt].astype(jnp.float32) + r * gh_n)
        return (1.0 - z) * n + z * h

    h = jax.lax.fori_loop(0, tc, step, hout_ref[...], unroll=unroll)
    hout_ref[...] = h


def _pick_bc(B, bc_max):
    """Batch block size: divides B and is either B itself or a multiple of 8."""
    if B <= bc_max:
        return B
    for cand in range(min(bc_max, B), 7, -1):
        if cand % 8 == 0 and B % cand == 0:
            return cand
    return B


def _pick_tc(T, bc, H, gi_itemsize, tc_max, vmem_budget_bytes):
    """Timesteps per chunk sized from the VMEM budget (double-buffered gi blocks)."""
    reserved = 3 * H * H * 2 + bc * H * 4 + (2 << 20)   # weights + resident h + slack
    per_step = 2 * 3 * bc * H * gi_itemsize             # double-buffered gi per timestep
    tc = (vmem_budget_bytes - reserved) // per_step
    return int(max(1, min(T, tc_max, tc)))


def gru_forward(x, w_ih, w_hh, w_out, b_out, *,
                tc_max=32, bc_max=8, unroll=8,
                mxu_dtype=jnp.bfloat16, gi_dtype=jnp.bfloat16,
                vmem_budget_bytes=48 * 1024 * 1024):
    """x: (B, T, I) f32.  Parameters in PyTorch layout:
         w_ih (3H, I), w_hh (3H, H) with gate order [r, z, n],
         w_out (O, H), b_out (O,).
       Returns (B, O) f32 == fc_out(GRU(x)[:, -1, :])   (GRU biases are zero)."""
    B, T, I = x.shape
    H = w_hh.shape[1]
    assert w_ih.shape == (3 * H, I) and w_hh.shape == (3 * H, H)

    fused = (H % 128 == 0)   # fused (H, 3H) hidden matmul only when gate slices are lane-aligned

    # --- Off-critical-path input projection for ALL timesteps (one big matmul),
    #     emitted gate-major/time-major so the kernel reads lane-0-aligned (Bc, H) slabs.
    w_ih_g = w_ih.reshape(3, H, I).astype(mxu_dtype)                        # (3, H, I)
    gi = jnp.einsum('bti,ghi->gtbh', x.astype(mxu_dtype), w_ih_g,
                    preferred_element_type=jnp.float32)                     # (3, T, B, H) f32
    gi = gi.astype(gi_dtype)   # bf16 stream: halves HBM/DMA traffic and VMEM footprint

    # --- Hidden->gate weights laid out (H_in, ...) so the kernel computes h @ W.
    w_hh_g = w_hh.reshape(3, H, H)                                          # (gate, H_out, H_in)
    if fused:
        w_dev = jnp.concatenate([w_hh_g[g].T for g in range(3)], axis=1)    # (H, 3H)
    else:
        w_dev = jnp.transpose(w_hh_g, (0, 2, 1))                            # (3, H_in, H_out)
    w_dev = w_dev.astype(mxu_dtype)

    bc = _pick_bc(B, bc_max)
    tc = _pick_tc(T, bc, H, jnp.dtype(gi_dtype).itemsize, tc_max, vmem_budget_bytes)

    # --- Ragged tail: pad T to a multiple of tc with identity steps
    #     (z-gate input = +BIG -> z == 1 -> h passes through unchanged), so the
    #     hot loop needs no per-timestep masking in any chunk.
    n_chunks = pl.cdiv(T, tc)
    T_pad = n_chunks * tc
    if T_pad != T:
        pad = T_pad - T
        pad_blk = jnp.stack([
            jnp.zeros((pad, B, H), gi.dtype),           # r-gate input
            jnp.full((pad, B, H), _BIG, gi.dtype),      # z-gate input -> z == 1
            jnp.zeros((pad, B, H), gi.dtype),           # n-gate input
        ], axis=0)
        gi = jnp.concatenate([gi, pad_blk], axis=1)

    kernel = functools.partial(_gru_chunk_kernel, tc=tc, hidden=H, fused=fused,
                               unroll=min(unroll, tc))

    h_last = pl.pallas_call(
        kernel,
        out_shape=jax.ShapeDtypeStruct((B, H), jnp.float32),
        grid_spec=pltpu.PrefetchScalarGridSpec(
            num_scalar_prefetch=0,
            grid=(B // bc, n_chunks),
            in_specs=[
                pl.BlockSpec((3, tc, bc, H), lambda b, c: (0, c, b, 0)),
                pl.BlockSpec(memory_space=pl.ANY),     # weights: manual one-off copy
            ],
            out_specs=pl.BlockSpec((bc, H), lambda b, c: (b, 0)),
            scratch_shapes=[
                pltpu.VMEM(w_dev.shape, mxu_dtype),    # single-buffered weights
                pltpu.SemaphoreType.DMA(()),           # semaphore for the weight copy
            ],
        ),
        compiler_params=pltpu.CompilerParams(
            # Batch blocks are independent (megacore-parallel on v7x); the
            # time-chunk axis is the serial recurrence.
            dimension_semantics=("parallel", "arbitrary"),
            vmem_limit_bytes=int(vmem_budget_bytes),
        ),
    )(gi, w_dev)

    # --- Final Linear (fc_out) on the last hidden state, in plain XLA.
    # O is tiny (< 128 lanes); a one-off matmul XLA handles fine.
    return h_last @ w_out.T + b_out[None, :]


def gru_reference(x, w_ih, w_hh, w_out, b_out, *, matmul_dtype=jnp.float32,
                  gi_dtype=None, tanh_sigmoid=False):
    """Pure-JAX reference of the PyTorch module forward (GRU biases are zero).
    matmul_dtype / gi_dtype / tanh_sigmoid let us mirror the kernel's numerics."""
    B, T, I = x.shape
    H = w_hh.shape[1]
    sig = _sigmoid if tanh_sigmoid else jax.nn.sigmoid
    h = jnp.zeros((B, H), jnp.float32)
    wih_t = w_ih.T.astype(matmul_dtype)
    whh_t = w_hh.T.astype(matmul_dtype)
    for t in range(T):
        gi = jnp.dot(x[:, t, :].astype(matmul_dtype), wih_t,
                     preferred_element_type=jnp.float32)
        if gi_dtype is not None:
            gi = gi.astype(gi_dtype).astype(jnp.float32)
        gh = jnp.dot(h.astype(matmul_dtype), whh_t,
                     preferred_element_type=jnp.float32)
        i_r, i_z, i_n = gi[:, :H], gi[:, H:2 * H], gi[:, 2 * H:]
        h_r, h_z, h_n = gh[:, :H], gh[:, H:2 * H], gh[:, 2 * H:]
        r = sig(i_r + h_r)
        z = sig(i_z + h_z)
        n = jnp.tanh(i_n + r * h_n)
        h = (1.0 - z) * n + z * h
    return h @ w_out.T + b_out[None, :]


def _xavier_normal(key, shape):
    # nn.init.xavier_normal_ for a 2-D weight (fan_out, fan_in): std = sqrt(2/(fan_in+fan_out))
    fan_out, fan_in = shape
    std = (2.0 / (fan_in + fan_out)) ** 0.5
    return std * jax.random.normal(key, shape, dtype=jnp.float32)


def _run_case(B, T, I, H, O, key, *, tc_max=32, bc_max=8):
    k_x, k_ih, k_hh, k_out = jax.random.split(key, 4)
    x = jax.random.normal(k_x, (B, T, I), dtype=jnp.float32)

    # Parameter shapes mirror nn.GRU / nn.Linear; biases zeroed per init_weights().
    w_ih = _xavier_normal(k_ih, (3 * H, I))    # weight_ih_l0
    w_hh = _xavier_normal(k_hh, (3 * H, H))    # weight_hh_l0
    w_out = _xavier_normal(k_out, (O, H))      # fc_out.weight
    b_out = jnp.zeros((O,), jnp.float32)       # fc_out.bias

    out = jax.block_until_ready(
        gru_forward(x, w_ih, w_hh, w_out, b_out, tc_max=tc_max, bc_max=bc_max))
    assert out.shape == (B, O)

    # Matched-precision reference (bf16 MXU operands + bf16 gi stream, f32 accumulation).
    ref_m = gru_reference(x, w_ih, w_hh, w_out, b_out,
                          matmul_dtype=jnp.bfloat16, gi_dtype=jnp.bfloat16,
                          tanh_sigmoid=True)
    err_m = float(jnp.max(jnp.abs(out - ref_m)))
    assert err_m < 5e-3, f"matched-ref mismatch: max abs diff {err_m}"

    # Full-f32 (PyTorch-semantics) reference; loose tolerance since MXU operands
    # and the gi stream are deliberately bf16.
    ref_f = gru_reference(x, w_ih, w_hh, w_out, b_out)
    err_f = float(jnp.max(jnp.abs(out - ref_f)))
    assert err_f < 5e-2, f"f32-ref mismatch: max abs diff {err_f}"


if __name__ == "__main__":
    key = jax.random.PRNGKey(0)
    k1, k2 = jax.random.split(key)

    # Small module-consistent shapes; exercises the per-gate hidden-matmul path (H % 128 != 0).
    _run_case(B=2, T=8, I=16, H=32, O=10, key=k1)

    # Exercises the fused (H, 3H) path, the parallel batch grid axis, and ragged-T padding.
    _run_case(B=16, T=12, I=16, H=128, O=10, key=k2, tc_max=8, bc_max=8)

    print("KERNEL_OK")
</pallas_src>

<mosaic_0001>
module attributes {stable_mosaic.version = 11 : i64} {
  func.func @_gru_chunk_kernel(%arg0: i32, %arg1: i32, %arg2: memref<3x8x2x32xbf16, #tpu.memory_space<vmem>>, %arg3: memref<3x32x32xbf16, #tpu.memory_space<any>>, %arg4: memref<2x32xf32, #tpu.memory_space<vmem>>, %arg5: memref<3x32x32xbf16, #tpu.memory_space<vmem>>, %arg6: memref<!tpu.dma_semaphore, #tpu.memory_space<semaphore_mem>>) attributes {dimension_semantics = [#tpu.dimension_semantics<parallel>, #tpu.dimension_semantics<arbitrary>], iteration_bounds = array<i64: 1, 1>, scalar_prefetch = 0 : i64, scratch_operands = 2 : i64, tpu.core_type = #tpu.core_type<tc>, window_params = [{transform_indices = @transform_0, window_bounds = array<i64: 3, 8, 2, 32>}, {}, {transform_indices = @transform_2, window_bounds = array<i64: 2, 32>}]} {
    %c0_i32 = arith.constant 0 : i32
    %0 = arith.cmpi eq, %arg1, %c0_i32 : i32
    %1 = arith.extui %0 : i1 to i32
    %c0_i32_0 = arith.constant 0 : i32
    %2 = arith.cmpi ne, %1, %c0_i32_0 : i32
    scf.if %2 {
      tpu.enqueue_dma source(%arg3 : memref<3x32x32xbf16, #tpu.memory_space<any>>) target(%arg5 : memref<3x32x32xbf16, #tpu.memory_space<vmem>>) target_semaphore(%arg6 : memref<!tpu.dma_semaphore, #tpu.memory_space<semaphore_mem>>)
      tpu.wait_dma2 semaphore(%arg6 : memref<!tpu.dma_semaphore, #tpu.memory_space<semaphore_mem>>) src(%arg3 : memref<3x32x32xbf16, #tpu.memory_space<any>>) dst(%arg5 : memref<3x32x32xbf16, #tpu.memory_space<vmem>>)
      %cst_163 = arith.constant 0.000000e+00 : f32
      %331 = vector.broadcast %cst_163 : f32 to vector<2x32xf32>
      %c0_164 = arith.constant 0 : index
      %c0_165 = arith.constant 0 : index
      %332 = vector.load %arg4[%c0_164, %c0_165] : memref<2x32xf32, #tpu.memory_space<vmem>>, vector<2x32xf32>
      tpu.vector_store %arg4[%c0_164, %c0_165], %331 {strides = array<i32>} : memref<2x32xf32, #tpu.memory_space<vmem>>, vector<2x32xf32>,
    } else {
    }
    %c0 = arith.constant 0 : index
    %c0_1 = arith.constant 0 : index
    %c0_2 = arith.constant 0 : index
    %3 = vector.load %arg5[%c0, %c0_1, %c0_2] : memref<3x32x32xbf16, #tpu.memory_space<vmem>>, vector<1x32x32xbf16>
    %4 = vector.shape_cast %3 : vector<1x32x32xbf16> to vector<32x32xbf16>
    %c1 = arith.constant 1 : index
    %c0_3 = arith.constant 0 : index
    %c0_4 = arith.constant 0 : index
    %5 = vector.load %arg5[%c1, %c0_3, %c0_4] : memref<3x32x32xbf16, #tpu.memory_space<vmem>>, vector<1x32x32xbf16>
    %6 = vector.shape_cast %5 : vector<1x32x32xbf16> to vector<32x32xbf16>
    %c2 = arith.constant 2 : index
    %c0_5 = arith.constant 0 : index
    %c0_6 = arith.constant 0 : index
    %7 = vector.load %arg5[%c2, %c0_5, %c0_6] : memref<3x32x32xbf16, #tpu.memory_space<vmem>>, vector<1x32x32xbf16>
    %8 = vector.shape_cast %7 : vector<1x32x32xbf16> to vector<32x32xbf16>
    %c0_7 = arith.constant 0 : index
    %c0_8 = arith.constant 0 : index
    %9 = vector.load %arg4[%c0_7, %c0_8] : memref<2x32xf32, #tpu.memory_space<vmem>>, vector<2x32xf32>
    %c0_i32_9 = arith.constant 0 : i32
    %10 = arith.truncf %9 : vector<2x32xf32> to vector<2x32xbf16>
    %cst = arith.constant dense<0.000000e+00> : vector<2x32xf32>
    %11 = tpu.matmul %10, %4, %cst {dimension_numbers = #tpu.dot_dimension_numbers<[1], [0], [0], [1], [0, 0, 1, 1], [], []>} : vector<2x32xbf16>, vector<32x32xbf16>, vector<2x32xf32> -> vector<2x32xf32>
    %cst_10 = arith.constant dense<0.000000e+00> : vector<2x32xf32>
    %12 = tpu.matmul %10, %6, %cst_10 {dimension_numbers = #tpu.dot_dimension_numbers<[1], [0], [0], [1], [0, 0, 1, 1], [], []>} : vector<2x32xbf16>, vector<32x32xbf16>, vector<2x32xf32> -> vector<2x32xf32>
    %cst_11 = arith.constant dense<0.000000e+00> : vector<2x32xf32>
    %13 = tpu.matmul %10, %8, %cst_11 {dimension_numbers = #tpu.dot_dimension_numbers<[1], [0], [0], [1], [0, 0, 1, 1], [], []>} : vector<2x32xbf16>, vector<32x32xbf16>, vector<2x32xf32> -> vector<2x32xf32>
    %c0_12 = arith.constant 0 : index
    %14 = arith.index_cast %c0_i32_9 : i32 to index
    %c0_13 = arith.constant 0 : index
    %c0_14 = arith.constant 0 : index
    %15 = vector.load %arg2[%c0_12, %14, %c0_13, %c0_14] : memref<3x8x2x32xbf16, #tpu.memory_space<vmem>>, vector<1x1x2x32xbf16>
    %16 = vector.shape_cast %15 : vector<1x1x2x32xbf16> to vector<2x32xbf16>
    %17 = arith.extf %16 : vector<2x32xbf16> to vector<2x32xf32>
    %18 = arith.addf %17, %11 : vector<2x32xf32>
    %cst_15 = arith.constant 5.000000e-01 : f32
    %19 = vector.broadcast %cst_15 : f32 to vector<2x32xf32>
    %20 = arith.mulf %19, %18 : vector<2x32xf32>
    %21 = math.tanh %20 : vector<2x32xf32>
    %cst_16 = arith.constant 1.000000e+00 : f32
    %22 = vector.broadcast %cst_16 : f32 to vector<2x32xf32>
    %23 = arith.addf %22, %21 : vector<2x32xf32>
    %cst_17 = arith.constant 5.000000e-01 : f32
    %24 = vector.broadcast %cst_17 : f32 to vector<2x32xf32>
    %25 = arith.mulf %24, %23 : vector<2x32xf32>
    %c1_18 = arith.constant 1 : index
    %26 = arith.index_cast %c0_i32_9 : i32 to index
    %c0_19 = arith.constant 0 : index
    %c0_20 = arith.constant 0 : index
    %27 = vector.load %arg2[%c1_18, %26, %c0_19, %c0_20] : memref<3x8x2x32xbf16, #tpu.memory_space<vmem>>, vector<1x1x2x32xbf16>
    %28 = vector.shape_cast %27 : vector<1x1x2x32xbf16> to vector<2x32xbf16>
    %29 = arith.extf %28 : vector<2x32xbf16> to vector<2x32xf32>
    %30 = arith.addf %29, %12 : vector<2x32xf32>
    %cst_21 = arith.constant 5.000000e-01 : f32
    %31 = vector.broadcast %cst_21 : f32 to vector<2x32xf32>
    %32 = arith.mulf %31, %30 : vector<2x32xf32>
    %33 = math.tanh %32 : vector<2x32xf32>
    %cst_22 = arith.constant 1.000000e+00 : f32
    %34 = vector.broadcast %cst_22 : f32 to vector<2x32xf32>
    %35 = arith.addf %34, %33 : vector<2x32xf32>
    %cst_23 = arith.constant 5.000000e-01 : f32
    %36 = vector.broadcast %cst_23 : f32 to vector<2x32xf32>
    %37 = arith.mulf %36, %35 : vector<2x32xf32>
    %c2_24 = arith.constant 2 : index
    %38 = arith.index_cast %c0_i32_9 : i32 to index
    %c0_25 = arith.constant 0 : index
    %c0_26 = arith.constant 0 : index
    %39 = vector.load %arg2[%c2_24, %38, %c0_25, %c0_26] : memref<3x8x2x32xbf16, #tpu.memory_space<vmem>>, vector<1x1x2x32xbf16>
    %40 = vector.shape_cast %39 : vector<1x1x2x32xbf16> to vector<2x32xbf16>
    %41 = arith.extf %40 : vector<2x32xbf16> to vector<2x32xf32>
    %42 = arith.mulf %25, %13 : vector<2x32xf32>
    %43 = arith.addf %41, %42 : vector<2x32xf32>
    %44 = math.tanh %43 : vector<2x32xf32>
    %cst_27 = arith.constant 1.000000e+00 : f32
    %45 = vector.broadcast %cst_27 : f32 to vector<2x32xf32>
    %46 = arith.subf %45, %37 : vector<2x32xf32>
    %47 = arith.mulf %46, %44 : vector<2x32xf32>
    %48 = arith.mulf %37, %9 : vector<2x32xf32>
    %49 = arith.addf %47, %48 : vector<2x32xf32>
    %c1_i32 = arith.constant 1 : i32
    %50 = arith.truncf %49 : vector<2x32xf32> to vector<2x32xbf16>
    %cst_28 = arith.constant dense<0.000000e+00> : vector<2x32xf32>
    %51 = tpu.matmul %50, %4, %cst_28 {dimension_numbers = #tpu.dot_dimension_numbers<[1], [0], [0], [1], [0, 0, 1, 1], [], []>} : vector<2x32xbf16>, vector<32x32xbf16>, vector<2x32xf32> -> vector<2x32xf32>
    %cst_29 = arith.constant dense<0.000000e+00> : vector<2x32xf32>
    %52 = tpu.matmul %50, %6, %cst_29 {dimension_numbers = #tpu.dot_dimension_numbers<[1], [0], [0], [1], [0, 0, 1, 1], [], []>} : vector<2x32xbf16>, vector<32x32xbf16>, vector<2x32xf32> -> vector<2x32xf32>
    %cst_30 = arith.constant dense<0.000000e+00> : vector<2x32xf32>
    %53 = tpu.matmul %50, %8, %cst_30 {dimension_numbers = #tpu.dot_dimension_numbers<[1], [0], [0], [1], [0, 0, 1, 1], [], []>} : vector<2x32xbf16>, vector<32x32xbf16>, vector<2x32xf32> -> vector<2x32xf32>
    %c0_31 = arith.constant 0 : index
    %54 = arith.index_cast %c1_i32 : i32 to index
    %c0_32 = arith.constant 0 : index
    %c0_33 = arith.constant 0 : index
    %55 = vector.load %arg2[%c0_31, %54, %c0_32, %c0_33] : memref<3x8x2x32xbf16, #tpu.memory_space<vmem>>, vector<1x1x2x32xbf16>
    %56 = vector.shape_cast %55 : vector<1x1x2x32xbf16> to vector<2x32xbf16>
    %57 = arith.extf %56 : vector<2x32xbf16> to vector<2x32xf32>
    %58 = arith.addf %57, %51 : vector<2x32xf32>
    %cst_34 = arith.constant 5.000000e-01 : f32
    %59 = vector.broadcast %cst_34 : f32 to vector<2x32xf32>
    %60 = arith.mulf %59, %58 : vector<2x32xf32>
    %61 = math.tanh %60 : vector<2x32xf32>
    %cst_35 = arith.constant 1.000000e+00 : f32
    %62 = vector.broadcast %cst_35 : f32 to vector<2x32xf32>
    %63 = arith.addf %62, %61 : vector<2x32xf32>
    %cst_36 = arith.constant 5.000000e-01 : f32
    %64 = vector.broadcast %cst_36 : f32 to vector<2x32xf32>
    %65 = arith.mulf %64, %63 : vector<2x32xf32>
    %c1_37 = arith.constant 1 : index
    %66 = arith.index_cast %c1_i32 : i32 to index
    %c0_38 = arith.constant 0 : index
    %c0_39 = arith.constant 0 : index
    %67 = vector.load %arg2[%c1_37, %66, %c0_38, %c0_39] : memref<3x8x2x32xbf16, #tpu.memory_space<vmem>>, vector<1x1x2x32xbf16>
    %68 = vector.shape_cast %67 : vector<1x1x2x32xbf16> to vector<2x32xbf16>
    %69 = arith.extf %68 : vector<2x32xbf16> to vector<2x32xf32>
    %70 = arith.addf %69, %52 : vector<2x32xf32>
    %cst_40 = arith.constant 5.000000e-01 : f32
    %71 = vector.broadcast %cst_40 : f32 to vector<2x32xf32>
    %72 = arith.mulf %71, %70 : vector<2x32xf32>
    %73 = math.tanh %72 : vector<2x32xf32>
    %cst_41 = arith.constant 1.000000e+00 : f32
    %74 = vector.broadcast %cst_41 : f32 to vector<2x32xf32>
    %75 = arith.addf %74, %73 : vector<2x32xf32>
    %cst_42 = arith.constant 5.000000e-01 : f32
    %76 = vector.broadcast %cst_42 : f32 to vector<2x32xf32>
    %77 = arith.mulf %76, %75 : vector<2x32xf32>
    %c2_43 = arith.constant 2 : index
    %78 = arith.index_cast %c1_i32 : i32 to index
    %c0_44 = arith.constant 0 : index
    %c0_45 = arith.constant 0 : index
    %79 = vector.load %arg2[%c2_43, %78, %c0_44, %c0_45] : memref<3x8x2x32xbf16, #tpu.memory_space<vmem>>, vector<1x1x2x32xbf16>
    %80 = vector.shape_cast %79 : vector<1x1x2x32xbf16> to vector<2x32xbf16>
    %81 = arith.extf %80 : vector<2x32xbf16> to vector<2x32xf32>
    %82 = arith.mulf %65, %53 : vector<2x32xf32>
    %83 = arith.addf %81, %82 : vector<2x32xf32>
    %84 = math.tanh %83 : vector<2x32xf32>
    %cst_46 = arith.constant 1.000000e+00 : f32
    %85 = vector.broadcast %cst_46 : f32 to vector<2x32xf32>
    %86 = arith.subf %85, %77 : vector<2x32xf32>
    %87 = arith.mulf %86, %84 : vector<2x32xf32>
    %88 = arith.mulf %77, %49 : vector<2x32xf32>
    %89 = arith.addf %87, %88 : vector<2x32xf32>
    %c2_i32 = arith.constant 2 : i32
    %90 = arith.truncf %89 : vector<2x32xf32> to vector<2x32xbf16>
    %cst_47 = arith.constant dense<0.000000e+00> : vector<2x32xf32>
    %91 = tpu.matmul %90, %4, %cst_47 {dimension_numbers = #tpu.dot_dimension_numbers<[1], [0], [0], [1], [0, 0, 1, 1], [], []>} : vector<2x32xbf16>, vector<32x32xbf16>, vector<2x32xf32> -> vector<2x32xf32>
    %cst_48 = arith.constant dense<0.000000e+00> : vector<2x32xf32>
    %92 = tpu.matmul %90, %6, %cst_48 {dimension_numbers = #tpu.dot_dimension_numbers<[1], [0], [0], [1], [0, 0, 1, 1], [], []>} : vector<2x32xbf16>, vector<32x32xbf16>, vector<2x32xf32> -> vector<2x32xf32>
    %cst_49 = arith.constant dense<0.000000e+00> : vector<2x32xf32>
    %93 = tpu.matmul %90, %8, %cst_49 {dimension_numbers = #tpu.dot_dimension_numbers<[1], [0], [0], [1], [0, 0, 1, 1], [], []>} : vector<2x32xbf16>, vector<32x32xbf16>, vector<2x32xf32> -> vector<2x32xf32>
    %c0_50 = arith.constant 0 : index
    %94 = arith.index_cast %c2_i32 : i32 to index
    %c0_51 = arith.constant 0 : index
    %c0_52 = arith.constant 0 : index
    %95 = vector.load %arg2[%c0_50, %94, %c0_51, %c0_52] : memref<3x8x2x32xbf16, #tpu.memory_space<vmem>>, vector<1x1x2x32xbf16>
    %96 = vector.shape_cast %95 : vector<1x1x2x32xbf16> to vector<2x32xbf16>
    %97 = arith.extf %96 : vector<2x32xbf16> to vector<2x32xf32>
    %98 = arith.addf %97, %91 : vector<2x32xf32>
    %cst_53 = arith.constant 5.000000e-01 : f32
    %99 = vector.broadcast %cst_53 : f32 to vector<2x32xf32>
    %100 = arith.mulf %99, %98 : vector<2x32xf32>
    %101 = math.tanh %100 : vector<2x32xf32>
    %cst_54 = arith.constant 1.000000e+00 : f32
    %102 = vector.broadcast %cst_54 : f32 to vector<2x32xf32>
    %103 = arith.addf %102, %101 : vector<2x32xf32>
    %cst_55 = arith.constant 5.000000e-01 : f32
    %104 = vector.broadcast %cst_55 : f32 to vector<2x32xf32>
    %105 = arith.mulf %104, %103 : vector<2x32xf32>
    %c1_56 = arith.constant 1 : index
    %106 = arith.index_cast %c2_i32 : i32 to index
    %c0_57 = arith.constant 0 : index
    %c0_58 = arith.constant 0 : index
    %107 = vector.load %arg2[%c1_56, %106, %c0_57, %c0_58] : memref<3x8x2x32xbf16, #tpu.memory_space<vmem>>, vector<1x1x2x32xbf16>
    %108 = vector.shape_cast %107 : vector<1x1x2x32xbf16> to vector<2x32xbf16>
    %109 = arith.extf %108 : vector<2x32xbf16> to vector<2x32xf32>
    %110 = arith.addf %109, %92 : vector<2x32xf32>
    %cst_59 = arith.constant 5.000000e-01 : f32
    %111 = vector.broadcast %cst_59 : f32 to vector<2x32xf32>
    %112 = arith.mulf %111, %110 : vector<2x32xf32>
    %113 = math.tanh %112 : vector<2x32xf32>
    %cst_60 = arith.constant 1.000000e+00 : f32
    %114 = vector.broadcast %cst_60 : f32 to vector<2x32xf32>
    %115 = arith.addf %114, %113 : vector<2x32xf32>
    %cst_61 = arith.constant 5.000000e-01 : f32
    %116 = vector.broadcast %cst_61 : f32 to vector<2x32xf32>
    %117 = arith.mulf %116, %115 : vector<2x32xf32>
    %c2_62 = arith.constant 2 : index
    %118 = arith.index_cast %c2_i32 : i32 to index
    %c0_63 = arith.constant 0 : index
    %c0_64 = arith.constant 0 : index
    %119 = vector.load %arg2[%c2_62, %118, %c0_63, %c0_64] : memref<3x8x2x32xbf16, #tpu.memory_space<vmem>>, vector<1x1x2x32xbf16>
    %120 = vector.shape_cast %119 : vector<1x1x2x32xbf16> to vector<2x32xbf16>
    %121 = arith.extf %120 : vector<2x32xbf16> to vector<2x32xf32>
    %122 = arith.mulf %105, %93 : vector<2x32xf32>
    %123 = arith.addf %121, %122 : vector<2x32xf32>
    %124 = math.tanh %123 : vector<2x32xf32>
    %cst_65 = arith.constant 1.000000e+00 : f32
    %125 = vector.broadcast %cst_65 : f32 to vector<2x32xf32>
    %126 = arith.subf %125, %117 : vector<2x32xf32>
    %127 = arith.mulf %126, %124 : vector<2x32xf32>
    %128 = arith.mulf %117, %89 : vector<2x32xf32>
    %129 = arith.addf %127, %128 : vector<2x32xf32>
    %c3_i32 = arith.constant 3 : i32
    %130 = arith.truncf %129 : vector<2x32xf32> to vector<2x32xbf16>
    %cst_66 = arith.constant dense<0.000000e+00> : vector<2x32xf32>
    %131 = tpu.matmul %130, %4, %cst_66 {dimension_numbers = #tpu.dot_dimension_numbers<[1], [0], [0], [1], [0, 0, 1, 1], [], []>} : vector<2x32xbf16>, vector<32x32xbf16>, vector<2x32xf32> -> vector<2x32xf32>
    %cst_67 = arith.constant dense<0.000000e+00> : vector<2x32xf32>
    %132 = tpu.matmul %130, %6, %cst_67 {dimension_numbers = #tpu.dot_dimension_numbers<[1], [0], [0], [1], [0, 0, 1, 1], [], []>} : vector<2x32xbf16>, vector<32x32xbf16>, vector<2x32xf32> -> vector<2x32xf32>
    %cst_68 = arith.constant dense<0.000000e+00> : vector<2x32xf32>
    %133 = tpu.matmul %130, %8, %cst_68 {dimension_numbers = #tpu.dot_dimension_numbers<[1], [0], [0], [1], [0, 0, 1, 1], [], []>} : vector<2x32xbf16>, vector<32x32xbf16>, vector<2x32xf32> -> vector<2x32xf32>
    %c0_69 = arith.constant 0 : index
    %134 = arith.index_cast %c3_i32 : i32 to index
    %c0_70 = arith.constant 0 : index
    %c0_71 = arith.constant 0 : index
    %135 = vector.load %arg2[%c0_69, %134, %c0_70, %c0_71] : memref<3x8x2x32xbf16, #tpu.memory_space<vmem>>, vector<1x1x2x32xbf16>
    %136 = vector.shape_cast %135 : vector<1x1x2x32xbf16> to vector<2x32xbf16>
    %137 = arith.extf %136 : vector<2x32xbf16> to vector<2x32xf32>
    %138 = arith.addf %137, %131 : vector<2x32xf32>
    %cst_72 = arith.constant 5.000000e-01 : f32
    %139 = vector.broadcast %cst_72 : f32 to vector<2x32xf32>
    %140 = arith.mulf %139, %138 : vector<2x32xf32>
    %141 = math.tanh %140 : vector<2x32xf32>
    %cst_73 = arith.constant 1.000000e+00 : f32
    %142 = vector.broadcast %cst_73 : f32 to vector<2x32xf32>
    %143 = arith.addf %142, %141 : vector<2x32xf32>
    %cst_74 = arith.constant 5.000000e-01 : f32
    %144 = vector.broadcast %cst_74 : f32 to vector<2x32xf32>
    %145 = arith.mulf %144, %143 : vector<2x32xf32>
    %c1_75 = arith.constant 1 : index
    %146 = arith.index_cast %c3_i32 : i32 to index
    %c0_76 = arith.constant 0 : index
    %c0_77 = arith.constant 0 : index
    %147 = vector.load %arg2[%c1_75, %146, %c0_76, %c0_77] : memref<3x8x2x32xbf16, #tpu.memory_space<vmem>>, vector<1x1x2x32xbf16>
    %148 = vector.shape_cast %147 : vector<1x1x2x32xbf16> to vector<2x32xbf16>
    %149 = arith.extf %148 : vector<2x32xbf16> to vector<2x32xf32>
    %150 = arith.addf %149, %132 : vector<2x32xf32>
    %cst_78 = arith.constant 5.000000e-01 : f32
    %151 = vector.broadcast %cst_78 : f32 to vector<2x32xf32>
    %152 = arith.mulf %151, %150 : vector<2x32xf32>
    %153 = math.tanh %152 : vector<2x32xf32>
    %cst_79 = arith.constant 1.000000e+00 : f32
    %154 = vector.broadcast %cst_79 : f32 to vector<2x32xf32>
    %155 = arith.addf %154, %153 : vector<2x32xf32>
    %cst_80 = arith.constant 5.000000e-01 : f32
    %156 = vector.broadcast %cst_80 : f32 to vector<2x32xf32>
    %157 = arith.mulf %156, %155 : vector<2x32xf32>
    %c2_81 = arith.constant 2 : index
    %158 = arith.index_cast %c3_i32 : i32 to index
    %c0_82 = arith.constant 0 : index
    %c0_83 = arith.constant 0 : index
    %159 = vector.load %arg2[%c2_81, %158, %c0_82, %c0_83] : memref<3x8x2x32xbf16, #tpu.memory_space<vmem>>, vector<1x1x2x32xbf16>
    %160 = vector.shape_cast %159 : vector<1x1x2x32xbf16> to vector<2x32xbf16>
    %161 = arith.extf %160 : vector<2x32xbf16> to vector<2x32xf32>
    %162 = arith.mulf %145, %133 : vector<2x32xf32>
    %163 = arith.addf %161, %162 : vector<2x32xf32>
    %164 = math.tanh %163 : vector<2x32xf32>
    %cst_84 = arith.constant 1.000000e+00 : f32
    %165 = vector.broadcast %cst_84 : f32 to vector<2x32xf32>
    %166 = arith.subf %165, %157 : vector<2x32xf32>
    %167 = arith.mulf %166, %164 : vector<2x32xf32>
    %168 = arith.mulf %157, %129 : vector<2x32xf32>
    %169 = arith.addf %167, %168 : vector<2x32xf32>
    %c4_i32 = arith.constant 4 : i32
    %170 = arith.truncf %169 : vector<2x32xf32> to vector<2x32xbf16>
    %cst_85 = arith.constant dense<0.000000e+00> : vector<2x32xf32>
    %171 = tpu.matmul %170, %4, %cst_85 {dimension_numbers = #tpu.dot_dimension_numbers<[1], [0], [0], [1], [0, 0, 1, 1], [], []>} : vector<2x32xbf16>, vector<32x32xbf16>, vector<2x32xf32> -> vector<2x32xf32>
    %cst_86 = arith.constant dense<0.000000e+00> : vector<2x32xf32>
    %172 = tpu.matmul %170, %6, %cst_86 {dimension_numbers = #tpu.dot_dimension_numbers<[1], [0], [0], [1], [0, 0, 1, 1], [], []>} : vector<2x32xbf16>, vector<32x32xbf16>, vector<2x32xf32> -> vector<2x32xf32>
    %cst_87 = arith.constant dense<0.000000e+00> : vector<2x32xf32>
    %173 = tpu.matmul %170, %8, %cst_87 {dimension_numbers = #tpu.dot_dimension_numbers<[1], [0], [0], [1], [0, 0, 1, 1], [], []>} : vector<2x32xbf16>, vector<32x32xbf16>, vector<2x32xf32> -> vector<2x32xf32>
    %c0_88 = arith.constant 0 : index
    %174 = arith.index_cast %c4_i32 : i32 to index
    %c0_89 = arith.constant 0 : index
    %c0_90 = arith.constant 0 : index
    %175 = vector.load %arg2[%c0_88, %174, %c0_89, %c0_90] : memref<3x8x2x32xbf16, #tpu.memory_space<vmem>>, vector<1x1x2x32xbf16>
    %176 = vector.shape_cast %175 : vector<1x1x2x32xbf16> to vector<2x32xbf16>
    %177 = arith.extf %176 : vector<2x32xbf16> to vector<2x32xf32>
    %178 = arith.addf %177, %171 : vector<2x32xf32>
    %cst_91 = arith.constant 5.000000e-01 : f32
    %179 = vector.broadcast %cst_91 : f32 to vector<2x32xf32>
    %180 = arith.mulf %179, %178 : vector<2x32xf32>
    %181 = math.tanh %180 : vector<2x32xf32>
    %cst_92 = arith.constant 1.000000e+00 : f32
    %182 = vector.broadcast %cst_92 : f32 to vector<2x32xf32>
    %183 = arith.addf %182, %181 : vector<2x32xf32>
    %cst_93 = arith.constant 5.000000e-01 : f32
    %184 = vector.broadcast %cst_93 : f32 to vector<2x32xf32>
    %185 = arith.mulf %184, %183 : vector<2x32xf32>
    %c1_94 = arith.constant 1 : index
    %186 = arith.index_cast %c4_i32 : i32 to index
    %c0_95 = arith.constant 0 : index
    %c0_96 = arith.constant 0 : index
    %187 = vector.load %arg2[%c1_94, %186, %c0_95, %c0_96] : memref<3x8x2x32xbf16, #tpu.memory_space<vmem>>, vector<1x1x2x32xbf16>
    %188 = vector.shape_cast %187 : vector<1x1x2x32xbf16> to vector<2x32xbf16>
    %189 = arith.extf %188 : vector<2x32xbf16> to vector<2x32xf32>
    %190 = arith.addf %189, %172 : vector<2x32xf32>
    %cst_97 = arith.constant 5.000000e-01 : f32
    %191 = vector.broadcast %cst_97 : f32 to vector<2x32xf32>
    %192 = arith.mulf %191, %190 : vector<2x32xf32>
    %193 = math.tanh %192 : vector<2x32xf32>
    %cst_98 = arith.constant 1.000000e+00 : f32
    %194 = vector.broadcast %cst_98 : f32 to vector<2x32xf32>
    %195 = arith.addf %194, %193 : vector<2x32xf32>
    %cst_99 = arith.constant 5.000000e-01 : f32
    %196 = vector.broadcast %cst_99 : f32 to vector<2x32xf32>
    %197 = arith.mulf %196, %195 : vector<2x32xf32>
    %c2_100 = arith.constant 2 : index
    %198 = arith.index_cast %c4_i32 : i32 to index
    %c0_101 = arith.constant 0 : index
    %c0_102 = arith.constant 0 : index
    %199 = vector.load %arg2[%c2_100, %198, %c0_101, %c0_102] : memref<3x8x2x32xbf16, #tpu.memory_space<vmem>>, vector<1x1x2x32xbf16>
    %200 = vector.shape_cast %199 : vector<1x1x2x32xbf16> to vector<2x32xbf16>
    %201 = arith.extf %200 : vector<2x32xbf16> to vector<2x32xf32>
    %202 = arith.mulf %185, %173 : vector<2x32xf32>
    %203 = arith.addf %201, %202 : vector<2x32xf32>
    %204 = math.tanh %203 : vector<2x32xf32>
    %cst_103 = arith.constant 1.000000e+00 : f32
    %205 = vector.broadcast %cst_103 : f32 to vector<2x32xf32>
    %206 = arith.subf %205, %197 : vector<2x32xf32>
    %207 = arith.mulf %206, %204 : vector<2x32xf32>
    %208 = arith.mulf %197, %169 : vector<2x32xf32>
    %209 = arith.addf %207, %208 : vector<2x32xf32>
    %c5_i32 = arith.constant 5 : i32
    %210 = arith.truncf %209 : vector<2x32xf32> to vector<2x32xbf16>
    %cst_104 = arith.constant dense<0.000000e+00> : vector<2x32xf32>
    %211 = tpu.matmul %210, %4, %cst_104 {dimension_numbers = #tpu.dot_dimension_numbers<[1], [0], [0], [1], [0, 0, 1, 1], [], []>} : vector<2x32xbf16>, vector<32x32xbf16>, vector<2x32xf32> -> vector<2x32xf32>
    %cst_105 = arith.constant dense<0.000000e+00> : vector<2x32xf32>
    %212 = tpu.matmul %210, %6, %cst_105 {dimension_numbers = #tpu.dot_dimension_numbers<[1], [0], [0], [1], [0, 0, 1, 1], [], []>} : vector<2x32xbf16>, vector<32x32xbf16>, vector<2x32xf32> -> vector<2x32xf32>
    %cst_106 = arith.constant dense<0.000000e+00> : vector<2x32xf32>
    %213 = tpu.matmul %210, %8, %cst_106 {dimension_numbers = #tpu.dot_dimension_numbers<[1], [0], [0], [1], [0, 0, 1, 1], [], []>} : vector<2x32xbf16>, vector<32x32xbf16>, vector<2x32xf32> -> vector<2x32xf32>
    %c0_107 = arith.constant 0 : index
    %214 = arith.index_cast %c5_i32 : i32 to index
    %c0_108 = arith.constant 0 : index
    %c0_109 = arith.constant 0 : index
    %215 = vector.load %arg2[%c0_107, %214, %c0_108, %c0_109] : memref<3x8x2x32xbf16, #tpu.memory_space<vmem>>, vector<1x1x2x32xbf16>
    %216 = vector.shape_cast %215 : vector<1x1x2x32xbf16> to vector<2x32xbf16>
    %217 = arith.extf %216 : vector<2x32xbf16> to vector<2x32xf32>
    %218 = arith.addf %217, %211 : vector<2x32xf32>
    %cst_110 = arith.constant 5.000000e-01 : f32
    %219 = vector.broadcast %cst_110 : f32 to vector<2x32xf32>
    %220 = arith.mulf %219, %218 : vector<2x32xf32>
    %221 = math.tanh %220 : vector<2x32xf32>
    %cst_111 = arith.constant 1.000000e+00 : f32
    %222 = vector.broadcast %cst_111 : f32 to vector<2x32xf32>
    %223 = arith.addf %222, %221 : vector<2x32xf32>
    %cst_112 = arith.constant 5.000000e-01 : f32
    %224 = vector.broadcast %cst_112 : f32 to vector<2x32xf32>
    %225 = arith.mulf %224, %223 : vector<2x32xf32>
    %c1_113 = arith.constant 1 : index
    %226 = arith.index_cast %c5_i32 : i32 to index
    %c0_114 = arith.constant 0 : index
    %c0_115 = arith.constant 0 : index
    %227 = vector.load %arg2[%c1_113, %226, %c0_114, %c0_115] : memref<3x8x2x32xbf16, #tpu.memory_space<vmem>>, vector<1x1x2x32xbf16>
    %228 = vector.shape_cast %227 : vector<1x1x2x32xbf16> to vector<2x32xbf16>
    %229 = arith.extf %228 : vector<2x32xbf16> to vector<2x32xf32>
    %230 = arith.addf %229, %212 : vector<2x32xf32>
    %cst_116 = arith.constant 5.000000e-01 : f32
    %231 = vector.broadcast %cst_116 : f32 to vector<2x32xf32>
    %232 = arith.mulf %231, %230 : vector<2x32xf32>
    %233 = math.tanh %232 : vector<2x32xf32>
    %cst_117 = arith.constant 1.000000e+00 : f32
    %234 = vector.broadcast %cst_117 : f32 to vector<2x32xf32>
    %235 = arith.addf %234, %233 : vector<2x32xf32>
    %cst_118 = arith.constant 5.000000e-01 : f32
    %236 = vector.broadcast %cst_118 : f32 to vector<2x32xf32>
    %237 = arith.mulf %236, %235 : vector<2x32xf32>
    %c2_119 = arith.constant 2 : index
    %238 = arith.index_cast %c5_i32 : i32 to index
    %c0_120 = arith.constant 0 : index
    %c0_121 = arith.constant 0 : index
    %239 = vector.load %arg2[%c2_119, %238, %c0_120, %c0_121] : memref<3x8x2x32xbf16, #tpu.memory_space<vmem>>, vector<1x1x2x32xbf16>
    %240 = vector.shape_cast %239 : vector<1x1x2x32xbf16> to vector<2x32xbf16>
    %241 = arith.extf %240 : vector<2x32xbf16> to vector<2x32xf32>
    %242 = arith.mulf %225, %213 : vector<2x32xf32>
    %243 = arith.addf %241, %242 : vector<2x32xf32>
    %244 = math.tanh %243 : vector<2x32xf32>
    %cst_122 = arith.constant 1.000000e+00 : f32
    %245 = vector.broadcast %cst_122 : f32 to vector<2x32xf32>
    %246 = arith.subf %245, %237 : vector<2x32xf32>
    %247 = arith.mulf %246, %244 : vector<2x32xf32>
    %248 = arith.mulf %237, %209 : vector<2x32xf32>
    %249 = arith.addf %247, %248 : vector<2x32xf32>
    %c6_i32 = arith.constant 6 : i32
    %250 = arith.truncf %249 : vector<2x32xf32> to vector<2x32xbf16>
    %cst_123 = arith.constant dense<0.000000e+00> : vector<2x32xf32>
    %251 = tpu.matmul %250, %4, %cst_123 {dimension_numbers = #tpu.dot_dimension_numbers<[1], [0], [0], [1], [0, 0, 1, 1], [], []>} : vector<2x32xbf16>, vector<32x32xbf16>, vector<2x32xf32> -> vector<2x32xf32>
    %cst_124 = arith.constant dense<0.000000e+00> : vector<2x32xf32>
    %252 = tpu.matmul %250, %6, %cst_124 {dimension_numbers = #tpu.dot_dimension_numbers<[1], [0], [0], [1], [0, 0, 1, 1], [], []>} : vector<2x32xbf16>, vector<32x32xbf16>, vector<2x32xf32> -> vector<2x32xf32>
    %cst_125 = arith.constant dense<0.000000e+00> : vector<2x32xf32>
    %253 = tpu.matmul %250, %8, %cst_125 {dimension_numbers = #tpu.dot_dimension_numbers<[1], [0], [0], [1], [0, 0, 1, 1], [], []>} : vector<2x32xbf16>, vector<32x32xbf16>, vector<2x32xf32> -> vector<2x32xf32>
    %c0_126 = arith.constant 0 : index
    %254 = arith.index_cast %c6_i32 : i32 to index
    %c0_127 = arith.constant 0 : index
    %c0_128 = arith.constant 0 : index
    %255 = vector.load %arg2[%c0_126, %254, %c0_127, %c0_128] : memref<3x8x2x32xbf16, #tpu.memory_space<vmem>>, vector<1x1x2x32xbf16>
    %256 = vector.shape_cast %255 : vector<1x1x2x32xbf16> to vector<2x32xbf16>
    %257 = arith.extf %256 : vector<2x32xbf16> to vector<2x32xf32>
    %258 = arith.addf %257, %251 : vector<2x32xf32>
    %cst_129 = arith.constant 5.000000e-01 : f32
    %259 = vector.broadcast %cst_129 : f32 to vector<2x32xf32>
    %260 = arith.mulf %259, %258 : vector<2x32xf32>
    %261 = math.tanh %260 : vector<2x32xf32>
    %cst_130 = arith.constant 1.000000e+00 : f32
    %262 = vector.broadcast %cst_130 : f32 to vector<2x32xf32>
    %263 = arith.addf %262, %261 : vector<2x32xf32>
    %cst_131 = arith.constant 5.000000e-01 : f32
    %264 = vector.broadcast %cst_131 : f32 to vector<2x32xf32>
    %265 = arith.mulf %264, %263 : vector<2x32xf32>
    %c1_132 = arith.constant 1 : index
    %266 = arith.index_cast %c6_i32 : i32 to index
    %c0_133 = arith.constant 0 : index
    %c0_134 = arith.constant 0 : index
    %267 = vector.load %arg2[%c1_132, %266, %c0_133, %c0_134] : memref<3x8x2x32xbf16, #tpu.memory_space<vmem>>, vector<1x1x2x32xbf16>
    %268 = vector.shape_cast %267 : vector<1x1x2x32xbf16> to vector<2x32xbf16>
    %269 = arith.extf %268 : vector<2x32xbf16> to vector<2x32xf32>
    %270 = arith.addf %269, %252 : vector<2x32xf32>
    %cst_135 = arith.constant 5.000000e-01 : f32
    %271 = vector.broadcast %cst_135 : f32 to vector<2x32xf32>
    %272 = arith.mulf %271, %270 : vector<2x32xf32>
    %273 = math.tanh %272 : vector<2x32xf32>
    %cst_136 = arith.constant 1.000000e+00 : f32
    %274 = vector.broadcast %cst_136 : f32 to vector<2x32xf32>
    %275 = arith.addf %274, %273 : vector<2x32xf32>
    %cst_137 = arith.constant 5.000000e-01 : f32
    %276 = vector.broadcast %cst_137 : f32 to vector<2x32xf32>
    %277 = arith.mulf %276, %275 : vector<2x32xf32>
    %c2_138 = arith.constant 2 : index
    %278 = arith.index_cast %c6_i32 : i32 to index
    %c0_139 = arith.constant 0 : index
    %c0_140 = arith.constant 0 : index
    %279 = vector.load %arg2[%c2_138, %278, %c0_139, %c0_140] : memref<3x8x2x32xbf16, #tpu.memory_space<vmem>>, vector<1x1x2x32xbf16>
    %280 = vector.shape_cast %279 : vector<1x1x2x32xbf16> to vector<2x32xbf16>
    %281 = arith.extf %280 : vector<2x32xbf16> to vector<2x32xf32>
    %282 = arith.mulf %265, %253 : vector<2x32xf32>
    %283 = arith.addf %281, %282 : vector<2x32xf32>
    %284 = math.tanh %283 : vector<2x32xf32>
    %cst_141 = arith.constant 1.000000e+00 : f32
    %285 = vector.broadcast %cst_141 : f32 to vector<2x32xf32>
    %286 = arith.subf %285, %277 : vector<2x32xf32>
    %287 = arith.mulf %286, %284 : vector<2x32xf32>
    %288 = arith.mulf %277, %249 : vector<2x32xf32>
    %289 = arith.addf %287, %288 : vector<2x32xf32>
    %c7_i32 = arith.constant 7 : i32
    %290 = arith.truncf %289 : vector<2x32xf32> to vector<2x32xbf16>
    %cst_142 = arith.constant dense<0.000000e+00> : vector<2x32xf32>
    %291 = tpu.matmul %290, %4, %cst_142 {dimension_numbers = #tpu.dot_dimension_numbers<[1], [0], [0], [1], [0, 0, 1, 1], [], []>} : vector<2x32xbf16>, vector<32x32xbf16>, vector<2x32xf32> -> vector<2x32xf32>
    %cst_143 = arith.constant dense<0.000000e+00> : vector<2x32xf32>
    %292 = tpu.matmul %290, %6, %cst_143 {dimension_numbers = #tpu.dot_dimension_numbers<[1], [0], [0], [1], [0, 0, 1, 1], [], []>} : vector<2x32xbf16>, vector<32x32xbf16>, vector<2x32xf32> -> vector<2x32xf32>
    %cst_144 = arith.constant dense<0.000000e+00> : vector<2x32xf32>
    %293 = tpu.matmul %290, %8, %cst_144 {dimension_numbers = #tpu.dot_dimension_numbers<[1], [0], [0], [1], [0, 0, 1, 1], [], []>} : vector<2x32xbf16>, vector<32x32xbf16>, vector<2x32xf32> -> vector<2x32xf32>
    %c0_145 = arith.constant 0 : index
    %294 = arith.index_cast %c7_i32 : i32 to index
    %c0_146 = arith.constant 0 : index
    %c0_147 = arith.constant 0 : index
    %295 = vector.load %arg2[%c0_145, %294, %c0_146, %c0_147] : memref<3x8x2x32xbf16, #tpu.memory_space<vmem>>, vector<1x1x2x32xbf16>
    %296 = vector.shape_cast %295 : vector<1x1x2x32xbf16> to vector<2x32xbf16>
    %297 = arith.extf %296 : vector<2x32xbf16> to vector<2x32xf32>
    %298 = arith.addf %297, %291 : vector<2x32xf32>
    %cst_148 = arith.constant 5.000000e-01 : f32
    %299 = vector.broadcast %cst_148 : f32 to vector<2x32xf32>
    %300 = arith.mulf %299, %298 : vector<2x32xf32>
    %301 = math.tanh %300 : vector<2x32xf32>
    %cst_149 = arith.constant 1.000000e+00 : f32
    %302 = vector.broadcast %cst_149 : f32 to vector<2x32xf32>
    %303 = arith.addf %302, %301 : vector<2x32xf32>
    %cst_150 = arith.constant 5.000000e-01 : f32
    %304 = vector.broadcast %cst_150 : f32 to vector<2x32xf32>
    %305 = arith.mulf %304, %303 : vector<2x32xf32>
    %c1_151 = arith.constant 1 : index
    %306 = arith.index_cast %c7_i32 : i32 to index
    %c0_152 = arith.constant 0 : index
    %c0_153 = arith.constant 0 : index
    %307 = vector.load %arg2[%c1_151, %306, %c0_152, %c0_153] : memref<3x8x2x32xbf16, #tpu.memory_space<vmem>>, vector<1x1x2x32xbf16>
    %308 = vector.shape_cast %307 : vector<1x1x2x32xbf16> to vector<2x32xbf16>
    %309 = arith.extf %308 : vector<2x32xbf16> to vector<2x32xf32>
    %310 = arith.addf %309, %292 : vector<2x32xf32>
    %cst_154 = arith.constant 5.000000e-01 : f32
    %311 = vector.broadcast %cst_154 : f32 to vector<2x32xf32>
    %312 = arith.mulf %311, %310 : vector<2x32xf32>
    %313 = math.tanh %312 : vector<2x32xf32>
    %cst_155 = arith.constant 1.000000e+00 : f32
    %314 = vector.broadcast %cst_155 : f32 to vector<2x32xf32>
    %315 = arith.addf %314, %313 : vector<2x32xf32>
    %cst_156 = arith.constant 5.000000e-01 : f32
    %316 = vector.broadcast %cst_156 : f32 to vector<2x32xf32>
    %317 = arith.mulf %316, %315 : vector<2x32xf32>
    %c2_157 = arith.constant 2 : index
    %318 = arith.index_cast %c7_i32 : i32 to index
    %c0_158 = arith.constant 0 : index
    %c0_159 = arith.constant 0 : index
    %319 = vector.load %arg2[%c2_157, %318, %c0_158, %c0_159] : memref<3x8x2x32xbf16, #tpu.memory_space<vmem>>, vector<1x1x2x32xbf16>
    %320 = vector.shape_cast %319 : vector<1x1x2x32xbf16> to vector<2x32xbf16>
    %321 = arith.extf %320 : vector<2x32xbf16> to vector<2x32xf32>
    %322 = arith.mulf %305, %293 : vector<2x32xf32>
    %323 = arith.addf %321, %322 : vector<2x32xf32>
    %324 = math.tanh %323 : vector<2x32xf32>
    %cst_160 = arith.constant 1.000000e+00 : f32
    %325 = vector.broadcast %cst_160 : f32 to vector<2x32xf32>
    %326 = arith.subf %325, %317 : vector<2x32xf32>
    %327 = arith.mulf %326, %324 : vector<2x32xf32>
    %328 = arith.mulf %317, %289 : vector<2x32xf32>
    %329 = arith.addf %327, %328 : vector<2x32xf32>
    %c8_i32 = arith.constant 8 : i32
    %c0_161 = arith.constant 0 : index
    %c0_162 = arith.constant 0 : index
    %330 = vector.load %arg4[%c0_161, %c0_162] : memref<2x32xf32, #tpu.memory_space<vmem>>, vector<2x32xf32>
    tpu.vector_store %arg4[%c0_161, %c0_162], %329 {strides = array<i32>} : memref<2x32xf32, #tpu.memory_space<vmem>>, vector<2x32xf32>,
    return
  }
  func.func @transform_0(%arg0: i32, %arg1: i32) -> (i32, i32, i32, i32) {
    %c0_i32 = arith.constant 0 : i32
    %c0_i32_0 = arith.constant 0 : i32
    %c0_i32_1 = arith.constant 0 : i32
    return %c0_i32, %arg1, %arg0, %c0_i32_0 : i32, i32, i32, i32
  }
  func.func @transform_2(%arg0: i32, %arg1: i32) -> (i32, i32) {
    %c0_i32 = arith.constant 0 : i32
    %c0_i32_0 = arith.constant 0 : i32
    return %arg0, %c0_i32 : i32, i32
  }
}

</mosaic_0001>

<bundles_post_ra>
// kernel: tpu_custom_call.1
= control target key start
LH: loop header
LB: loop body
LE: loop exit
PB: predicated region body
PF: predicated region fallthrough
CT: control target
= control target key end

     0   :  { %7 = vsyncpa [#allocation5], 0  ;;  %s1962_s0 = inlined_call_operand.hbm [shape: bf16[3,8,2,32], index: 0, kind: input, shape index: {}]   ;;  %s1963_s1 = inlined_call_operand.hbm [shape: bf16[3,32,32], index: 1, kind: input, shape index: {}]   ;;  %s1964_s2 = inlined_call_operand.hbm [shape: f32[2,32], index: 2, kind: output, shape index: {}]  }
   0x1   :  { %8 = vsyncpa [#allocation6], 0  ;;  %s1743_s9 = smov [#allocation4]  }
   0x2   :  { %s14_s10 = sshll.u32 %s1743_s9, 4  ;;  %s15_s10 = int_to_ptr.vmem [resolvable:$true] %s14_s10 }
   0x3   :  { %s1685_s11 = scalar_lea.vmem %s15_s10, 384  ;;  %p1690_p1 = scmp.lt.s32.totalorder %s15_s10, %s15_s10 }
   0x4   :  { %p1686_p0 = scmp.ne.s32.totalorder %s15_s10, %s1685_s11  ;;  %p1691_p2 = scmp.lt.s32.totalorder %s1685_s11, %s1685_s11 }
   0x6   :  { %p1692_p3 = por %p1691_p2, %p1690_p1 }
   0x8   :  { %p1693_p4 = pnand %p1692_p3, %p1686_p0 }
   0xa   :  { %1696 = shalt.err (!%p1693_p4)
}
   0xb   :  { %s1744_s12 = smov 16   ;;  %s1745_s13 = smov 1  }
   0xc   :  { %20 = dma.hbm_to_vmem [thread:$0]  %s1962_s0, 384, %s15_s10, [#allocation5], %s1744_s12, %s1744_s12, %s1745_s13  }
   0xd   :  { %1737 = dma.done.wait [#allocation5], 384  }
   0xe   :  { %1738 = vsyncadd [#allocation5], 4294966912  ;;  %s1746_s16 = smov [#allocation2]  }
   0xf   :  { %s36_s17 = sshll.u32 %s1746_s16, 4  ;;  %s37_s17 = int_to_ptr.vmem [resolvable:$true] %s36_s17 }
  0x10   :  { %s1705_s18 = scalar_lea.vmem %s37_s17, 768  ;;  %p1710_p6 = scmp.lt.s32.totalorder %s37_s17, %s37_s17 }
  0x11   :  { %p1706_p5 = scmp.ne.s32.totalorder %s37_s17, %s1705_s18  ;;  %p1711_p7 = scmp.lt.s32.totalorder %s1705_s18, %s1705_s18 }
  0x13   :  { %p1712_p8 = por %p1711_p7, %p1710_p6 }
  0x15   :  { %p1713_p9 = pnand %p1712_p8, %p1706_p5 }
  0x17   :  { %1716 = shalt.err (!%p1713_p9)  }
  0x18   :  { %39 = dma.hbm_to_vmem [thread:$0]  %s1963_s1, 768, %s37_s17, [#allocation3] }
  0x19   :  { %1739 = dma.done.wait [#allocation3], 768 }
  0x1a   :  { %1740 = vsyncadd [#allocation3], 4294966528  ;;  %vm45_vm0 = vcmask 254976   ;;  %v1747_v0 = vmov 0.0   ;;  %vm1748_vm1 = vmmov 0   ;;  %v1779_v1 = vld [vmem:[#allocation2 + $0x8] sm:$0xff]  }
  0x1b   :  { %1424 = vmatprep.subr.bf16.mxu0 %v1747_v0  ;;  %1428 = vmatprep.mubr.msk.bf16.mxu0 %vm1748_vm1, %v1747_v0  ;;  %46 = vst.msk [vmem:[#allocation7] sm:$0x3] %vm45_vm0, %v1747_v0  ;;  %v1781_v2 = vld [vmem:[#allocation2] sm:$0xff]   ;;  %v1787_v4 = vld [vmem:[#allocation2 + $0x18] sm:$0xff]   ;;  %v1792_v6 = vld [vmem:[#allocation2 + $0x10] sm:$0xff]   ;;  %vm75_vm2 = vcmask 261120  }
  0x1c   :  { %1432 = vmatprep.subr.bf16.mxu1 %v1747_v0  ;;  %1436 = vmatprep.mubr.msk.bf16.mxu1 %vm1748_vm1, %v1747_v0  ;;  %v1796_v7 = vld [vmem:[#allocation2 + $0x28] sm:$0xff]   ;;  %v1802_v8 = vld [vmem:[#allocation2 + $0x20] sm:$0xff]   ;;  %v223_v9 = vld [vmem:[#allocation4] sm:$0x1]  ;;  %s1749_s0 = smov [#allocation7]  }
  0x1d   :  { %1425 = vmatpush3.bf16.msra.mxu0 %v1779_v1  ;;  %1433 = vmatpush3.bf16.msra.mxu1 %v1787_v4  ;;  %v224_v10 = vunpack.c.l.bf16 %v223_v9  ;;  %v231_v11 = vld [vmem:[#allocation4 + $0x8] sm:$0x1]  ;;  %v239_v30 = vld [vmem:[#allocation4 + $0x10] sm:$0x1]  ;;  %v373_v45 = vld [vmem:[#allocation4 + $0x1] sm:$0x1] }
  0x1e   :  { %1426 = vmatprep.subr.bf16.mxu0 %v1747_v0  ;;  %1434 = vmatprep.subr.bf16.mxu1 %v1747_v0  ;;  %v232_v14 = vunpack.c.l.bf16 %v231_v11  ;;  %v240_v33 = vunpack.c.l.bf16 %v239_v30  ;;  %v374_v46 = vunpack.c.l.bf16 %v373_v45  ;;  %v381_v49 = vld [vmem:[#allocation4 + $0x9] sm:$0x1]  ;;  %v389_v9 = vld [vmem:[#allocation4 + $0x11] sm:$0x1]  ;;  %v539_v45 = vld [vmem:[#allocation4 + $0x12] sm:$0x1] }
  0x1f   :  { %v382_v54 = vunpack.c.l.bf16 %v381_v49  ;;  %s1306_s1 = sshll.u32 %s1749_s0, 4  ;;  %s1307_s1 = int_to_ptr.vmem [resolvable:$true] %s1306_s1 }
  0x20   :  { %s1717_s21 = scalar_lea.vmem %s1307_s1, 32  ;;  %p1722_p11 = scmp.lt.s32.totalorder %s1307_s1, %s1307_s1 }
  0x21   :  { %1427 = vmatpush3.bf16.msra.mxu0 %v1781_v2  ;;  %1435 = vmatpush3.bf16.msra.mxu1 %v1792_v6  ;;  %p1718_p10 = scmp.ne.s32.totalorder %s1307_s1, %s1717_s21  ;;  %p1723_p12 = scmp.lt.s32.totalorder %s1717_s21, %s1717_s21 }
  0x22   :  { %v1784_v3 = vld [vmem:[#allocation7] sm:$0x3]  ;;  %1440 = vmatprep.subr.bf16.mxu0 %v1747_v0  ;;  %1448 = vmatprep.subr.bf16.mxu1 %v1747_v0 }
  0x23   :  { %v62_v5 = vpack.c.bf16 %v1784_v3, %v1784_v3  ;;  %p1724_p13 = por %p1723_p12, %p1722_p11 }
  0x25   :  { %1429 = vmatmul.mubr.msk.bf16.vlgmr.msra.gmra.mxu0 %vm75_vm2, %v62_v5  ;;  %1437 = vmatmul.mubr.msk.bf16.vlgmr.msra.gmra.mxu1 %vm75_vm2, %v62_v5  ;;  %p1725_p0 = pnand %p1724_p13, %p1718_p10 }
  0x26   :  { %1441 = vmatpush3.bf16.msra.mxu0 %v1796_v7  ;;  %1444 = vmatprep.mubr.msk.bf16.mxu0 %vm1748_vm1, %v1747_v0 }
  0x27   :  { %1442 = vmatprep.subr.bf16.mxu0 %v1747_v0  ;;  %1449 = vmatpush3.bf16.msra.mxu1 %v1779_v1 }
  0x28   :  { %1452 = vmatprep.mubr.msk.bf16.mxu1 %vm1748_vm1, %v1747_v0  ;;  %1450 = vmatprep.subr.bf16.mxu1 %v1747_v0 }
  0x2a   :  { %1443 = vmatpush3.bf16.msra.mxu0 %v1802_v8 }
  0x2b   :  { %1456 = vmatprep.subr.bf16.mxu0 %v1747_v0  ;;  %1451 = vmatpush3.bf16.msra.mxu1 %v1781_v2 }
  0x2c   :  { %1464 = vmatprep.subr.bf16.mxu1 %v1747_v0 }
  0x2d   :  { %1445 = vmatmul.mubr.msk.bf16.vlgmr.msra.gmra.mxu0 %vm75_vm2, %v62_v5 }
  0x2e   :  { %1457 = vmatpush3.bf16.msra.mxu0 %v1787_v4  ;;  %1460 = vmatprep.mubr.msk.bf16.mxu0 %vm1748_vm1, %v1747_v0 }
  0x2f   :  { %1458 = vmatprep.subr.bf16.mxu0 %v1747_v0 }
  0x32   :  { %1459 = vmatpush3.bf16.msra.mxu0 %v1792_v6 }
  0x33   :  { %1472 = vmatprep.subr.bf16.mxu0 %v1747_v0 }
  0xe5   :  { %v113_v12 = vpop.f32.mrf.mxu0  ;;  %v165_v17 = vpop.f32.mrf.mxu1 }
  0xe6   :  { %v225_v13 = vadd.f32 %v224_v10, %v113_v12  ;;  %v233_v19 = vadd.f32 %v232_v14, %v165_v17  ;;  %v390_v12 = vunpack.c.l.bf16 %v389_v9 }
  0xe7   :  { %v1430_v15 = vpop.f32.mrf.mxu0  ;;  %v1438_v20 = vpop.f32.mrf.mxu1 }
  0xe8   :  { %v226_v16 = vmul.f32 0.5, %v225_v13  ;;  %v234_v24 = vmul.f32 0.5, %v233_v19 }
  0xe9   :  { %v116_v18 = vpop.f32.mrf.mxu0  ;;  %v168_v22 = vpop.f32.mrf.mxu1 }
  0xea   :  { %1629 = vtanh.f32 %v226_v16 }
  0xeb   :  { %v1431_v21 = vpop.f32.mrf.mxu0  ;;  %v1439_v25 = vpop.f32.mrf.mxu1  ;;  %1631 = vtanh.f32 %v234_v24  ;;  %v523_v24 = vld [vmem:[#allocation4 + $0x2] sm:$0x1] }
  0xec   :  { %v524_v25 = vunpack.c.l.bf16 %v523_v24  ;;  %v689_v24 = vld [vmem:[#allocation4 + $0x13] sm:$0x1] }
  0xed   :  { %v217_v23 = vpop.f32.mrf.mxu0 }
  0xef   :  { %v1446_v26 = vpop.f32.mrf.mxu0 }
  0xf1   :  { %v220_v27 = vpop.f32.mrf.mxu0 }
  0xf3   :  { %v1447_v28 = vpop.f32.mrf.mxu0 }
  0xf4   :  { %v531_v28 = vld [vmem:[#allocation4 + $0xa] sm:$0x1] }
  0xf7   :  { %v1630_v29 = vpop.eup %1629 }
  0xf8   :  { %v228_v31 = vadd.f32 1.0, %v1630_v29  ;;  %v1632_v36 = vpop.eup %1631 }
  0xf9   :  { %v236_v37 = vadd.f32 1.0, %v1632_v36 }
  0xfa   :  { %v229_v32 = vmul.f32 0.5, %v228_v31 }
  0xfb   :  { %v237_v38 = vmul.f32 0.5, %v236_v37 }
  0xfc   :  { %v241_v34 = vmul.f32 %v229_v32, %v217_v23 }
  0xfd   :  { %v244_v39 = vsub.f32 1.0, %v237_v38  ;;  %v246_v41 = vmul.f32 %v237_v38, %v1784_v3 }
  0xfe   :  { %v242_v35 = vadd.f32 %v241_v34, %v240_v33  ;;  %v532_v33 = vunpack.c.l.bf16 %v531_v28 }
 0x100   :  { %1633 = vtanh.f32 %v242_v35 }
 0x10d   :  { %v1634_v40 = vpop.eup %1633 }
 0x10e   :  { %v245_v42 = vmul.f32 %v1634_v40, %v244_v39 }
 0x110   :  { %v247_v43 = vadd.f32 %v246_v41, %v245_v42 }
 0x112   :  { %v248_v44 = vpack.c.bf16 %v247_v43, %v247_v43 }
 0x114   :  { %1453 = vmatmul.mubr.msk.bf16.vlgmr.msra.gmra.mxu1 %vm75_vm2, %v248_v44  ;;  %1461 = vmatmul.mubr.msk.bf16.vlgmr.msra.gmra.mxu0 %vm75_vm2, %v248_v44 }
 0x115   :  { %1465 = vmatpush3.bf16.msra.mxu1 %v1796_v7  ;;  %1468 = vmatprep.mubr.msk.bf16.mxu1 %vm1748_vm1, %v1747_v0 }
 0x116   :  { %1466 = vmatprep.subr.bf16.mxu1 %v1747_v0  ;;  %1473 = vmatpush3.bf16.msra.mxu0 %v1779_v1 }
 0x117   :  { %1474 = vmatprep.subr.bf16.mxu0 %v1747_v0  ;;  %1476 = vmatprep.mubr.msk.bf16.mxu0 %vm1748_vm1, %v1747_v0 }
 0x119   :  { %1467 = vmatpush3.bf16.msra.mxu1 %v1802_v8 }
 0x11a   :  { %1480 = vmatprep.subr.bf16.mxu1 %v1747_v0  ;;  %1475 = vmatpush3.bf16.msra.mxu0 %v1781_v2 }
 0x11b   :  { %1488 = vmatprep.subr.bf16.mxu0 %v1747_v0 }
 0x11c   :  { %1469 = vmatmul.mubr.msk.bf16.vlgmr.msra.gmra.mxu1 %vm75_vm2, %v248_v44 }
 0x11d   :  { %1481 = vmatpush3.bf16.msra.mxu1 %v1787_v4  ;;  %1484 = vmatprep.mubr.msk.bf16.mxu1 %vm1748_vm1, %v1747_v0 }
 0x11e   :  { %1482 = vmatprep.subr.bf16.mxu1 %v1747_v0 }
 0x121   :  { %1483 = vmatpush3.bf16.msra.mxu1 %v1792_v6 }
 0x122   :  { %1496 = vmatprep.subr.bf16.mxu1 %v1747_v0 }
 0x1d4   :  { %v286_v47 = vpop.f32.mrf.mxu1  ;;  %v326_v48 = vpop.f32.mrf.mxu0 }
 0x1d5   :  { %v375_v50 = vadd.f32 %v374_v46, %v286_v47  ;;  %v383_v59 = vadd.f32 %v382_v54, %v326_v48  ;;  %v540_v48 = vunpack.c.l.bf16 %v539_v45 }
 0x1d6   :  { %v1454_v51 = vpop.f32.mrf.mxu1  ;;  %v1462_v52 = vpop.f32.mrf.mxu0 }
 0x1d7   :  { %v376_v53 = vmul.f32 0.5, %v375_v50  ;;  %v384_v62 = vmul.f32 0.5, %v383_v59 }
 0x1d8   :  { %v289_v55 = vpop.f32.mrf.mxu1  ;;  %v329_v56 = vpop.f32.mrf.mxu0 }
 0x1d9   :  { %1635 = vtanh.f32 %v376_v53 }
 0x1da   :  { %v1455_v57 = vpop.f32.mrf.mxu1  ;;  %v1463_v58 = vpop.f32.mrf.mxu0  ;;  %1637 = vtanh.f32 %v384_v62 }
 0x1dc   :  { %v366_v60 = vpop.f32.mrf.mxu1 }
 0x1de   :  { %v1470_v61 = vpop.f32.mrf.mxu1 }
 0x1e0   :  { %v369_v63 = vpop.f32.mrf.mxu1 }
 0x1e2   :  { %v1471_v3 = vpop.f32.mrf.mxu1 }
 0x1e3   :  { %v681_v3 = vld [vmem:[#allocation4 + $0xb] sm:$0x1] }
 0x1e6   :  { %v1636_v5 = vpop.eup %1635 }
 0x1e7   :  { %v378_v10 = vadd.f32 1.0, %v1636_v5  ;;  %v1638_v15 = vpop.eup %1637 }
 0x1e8   :  { %v386_v16 = vadd.f32 1.0, %v1638_v15 }
 0x1e9   :  { %v379_v11 = vmul.f32 0.5, %v378_v10 }
 0x1ea   :  { %v387_v17 = vmul.f32 0.5, %v386_v16 }
 0x1eb   :  { %v391_v13 = vmul.f32 %v379_v11, %v366_v60  ;;  %v673_v60 = vld [vmem:[#allocation4 + $0x3] sm:$0x1] }
 0x1ec   :  { %v394_v18 = vsub.f32 1.0, %v387_v17  ;;  %v396_v20 = vmul.f32 %v387_v17, %v247_v43  ;;  %v674_v61 = vunpack.c.l.bf16 %v673_v60  ;;  %v839_v60 = vld [vmem:[#allocation4 + $0x14] sm:$0x1] }
 0x1ed   :  { %v392_v14 = vadd.f32 %v391_v13, %v390_v12  ;;  %v682_v12 = vunpack.c.l.bf16 %v681_v3 }
 0x1ef   :  { %1639 = vtanh.f32 %v392_v14 }
 0x1fc   :  { %v1640_v19 = vpop.eup %1639 }
 0x1fd   :  { %v395_v21 = vmul.f32 %v1640_v19, %v394_v18 }
 0x1ff   :  { %v397_v22 = vadd.f32 %v396_v20, %v395_v21 }
 0x201   :  { %v398_v23 = vpack.c.bf16 %v397_v22, %v397_v22 }
 0x203   :  { %1477 = vmatmul.mubr.msk.bf16.vlgmr.msra.gmra.mxu0 %vm75_vm2, %v398_v23  ;;  %1485 = vmatmul.mubr.msk.bf16.vlgmr.msra.gmra.mxu1 %vm75_vm2, %v398_v23 }
 0x204   :  { %1489 = vmatpush3.bf16.msra.mxu0 %v1796_v7  ;;  %1492 = vmatprep.mubr.msk.bf16.mxu0 %vm1748_vm1, %v1747_v0 }
 0x205   :  { %1490 = vmatprep.subr.bf16.mxu0 %v1747_v0  ;;  %1497 = vmatpush3.bf16.msra.mxu1 %v1779_v1 }
 0x206   :  { %1498 = vmatprep.subr.bf16.mxu1 %v1747_v0  ;;  %1500 = vmatprep.mubr.msk.bf16.mxu1 %vm1748_vm1, %v1747_v0 }
 0x208   :  { %1491 = vmatpush3.bf16.msra.mxu0 %v1802_v8 }
 0x209   :  { %1504 = vmatprep.subr.bf16.mxu0 %v1747_v0  ;;  %1499 = vmatpush3.bf16.msra.mxu1 %v1781_v2 }
 0x20a   :  { %1512 = vmatprep.subr.bf16.mxu1 %v1747_v0 }
 0x20b   :  { %1493 = vmatmul.mubr.msk.bf16.vlgmr.msra.gmra.mxu0 %vm75_vm2, %v398_v23 }
 0x20c   :  { %1505 = vmatpush3.bf16.msra.mxu0 %v1787_v4  ;;  %1508 = vmatprep.mubr.msk.bf16.mxu0 %vm1748_vm1, %v1747_v0 }
 0x20d   :  { %1506 = vmatprep.subr.bf16.mxu0 %v1747_v0 }
 0x210   :  { %1507 = vmatpush3.bf16.msra.mxu0 %v1792_v6 }
 0x211   :  { %1520 = vmatprep.subr.bf16.mxu0 %v1747_v0 }
 0x2c3   :  { %v436_v26 = vpop.f32.mrf.mxu0  ;;  %v476_v27 = vpop.f32.mrf.mxu1 }
 0x2c4   :  { %v525_v29 = vadd.f32 %v524_v25, %v436_v26  ;;  %v533_v38 = vadd.f32 %v532_v33, %v476_v27  ;;  %v690_v27 = vunpack.c.l.bf16 %v689_v24 }
 0x2c5   :  { %v1478_v30 = vpop.f32.mrf.mxu0  ;;  %v1486_v31 = vpop.f32.mrf.mxu1 }
 0x2c6   :  { %v526_v32 = vmul.f32 0.5, %v525_v29  ;;  %v534_v41 = vmul.f32 0.5, %v533_v38 }
 0x2c7   :  { %v439_v34 = vpop.f32.mrf.mxu0  ;;  %v479_v35 = vpop.f32.mrf.mxu1 }
 0x2c8   :  { %1641 = vtanh.f32 %v526_v32 }
 0x2c9   :  { %v1479_v36 = vpop.f32.mrf.mxu0  ;;  %v1487_v37 = vpop.f32.mrf.mxu1  ;;  %1643 = vtanh.f32 %v534_v41 }
 0x2cb   :  { %v516_v39 = vpop.f32.mrf.mxu0 }
 0x2cd   :  { %v1494_v40 = vpop.f32.mrf.mxu0 }
 0x2cf   :  { %v519_v42 = vpop.f32.mrf.mxu0 }
 0x2d1   :  { %v1495_v43 = vpop.f32.mrf.mxu0 }
 0x2d2   :  { %v831_v43 = vld [vmem:[#allocation4 + $0xc] sm:$0x1] }
 0x2d5   :  { %v1642_v44 = vpop.eup %1641 }
 0x2d6   :  { %v528_v46 = vadd.f32 1.0, %v1642_v44  ;;  %v1644_v51 = vpop.eup %1643 }
 0x2d7   :  { %v536_v52 = vadd.f32 1.0, %v1644_v51 }
 0x2d8   :  { %v529_v47 = vmul.f32 0.5, %v528_v46 }
 0x2d9   :  { %v537_v53 = vmul.f32 0.5, %v536_v52 }
 0x2da   :  { %v541_v49 = vmul.f32 %v529_v47, %v516_v39  ;;  %v823_v39 = vld [vmem:[#allocation4 + $0x4] sm:$0x1] }
 0x2db   :  { %v544_v54 = vsub.f32 1.0, %v537_v53  ;;  %v546_v56 = vmul.f32 %v537_v53, %v397_v22  ;;  %v824_v40 = vunpack.c.l.bf16 %v823_v39  ;;  %v989_v39 = vld [vmem:[#allocation4 + $0x15] sm:$0x1] }
 0x2dc   :  { %v542_v50 = vadd.f32 %v541_v49, %v540_v48  ;;  %v832_v48 = vunpack.c.l.bf16 %v831_v43 }
 0x2de   :  { %1645 = vtanh.f32 %v542_v50 }
 0x2eb   :  { %v1646_v55 = vpop.eup %1645 }
 0x2ec   :  { %v545_v57 = vmul.f32 %v1646_v55, %v544_v54 }
 0x2ee   :  { %v547_v58 = vadd.f32 %v546_v56, %v545_v57 }
 0x2f0   :  { %v548_v59 = vpack.c.bf16 %v547_v58, %v547_v58 }
 0x2f2   :  { %1501 = vmatmul.mubr.msk.bf16.vlgmr.msra.gmra.mxu1 %vm75_vm2, %v548_v59  ;;  %1509 = vmatmul.mubr.msk.bf16.vlgmr.msra.gmra.mxu0 %vm75_vm2, %v548_v59 }
 0x2f3   :  { %1513 = vmatpush3.bf16.msra.mxu1 %v1796_v7  ;;  %1516 = vmatprep.mubr.msk.bf16.mxu1 %vm1748_vm1, %v1747_v0 }
 0x2f4   :  { %1514 = vmatprep.subr.bf16.mxu1 %v1747_v0  ;;  %1521 = vmatpush3.bf16.msra.mxu0 %v1779_v1 }
 0x2f5   :  { %1522 = vmatprep.subr.bf16.mxu0 %v1747_v0  ;;  %1524 = vmatprep.mubr.msk.bf16.mxu0 %vm1748_vm1, %v1747_v0 }
 0x2f7   :  { %1515 = vmatpush3.bf16.msra.mxu1 %v1802_v8 }
 0x2f8   :  { %1528 = vmatprep.subr.bf16.mxu1 %v1747_v0  ;;  %1523 = vmatpush3.bf16.msra.mxu0 %v1781_v2 }
 0x2f9   :  { %1536 = vmatprep.subr.bf16.mxu0 %v1747_v0 }
 0x2fa   :  { %1517 = vmatmul.mubr.msk.bf16.vlgmr.msra.gmra.mxu1 %vm75_vm2, %v548_v59 }
 0x2fb   :  { %1529 = vmatpush3.bf16.msra.mxu1 %v1787_v4  ;;  %1532 = vmatprep.mubr.msk.bf16.mxu1 %vm1748_vm1, %v1747_v0 }
 0x2fc   :  { %1530 = vmatprep.subr.bf16.mxu1 %v1747_v0 }
 0x2ff   :  { %1531 = vmatpush3.bf16.msra.mxu1 %v1792_v6 }
 0x300   :  { %1544 = vmatprep.subr.bf16.mxu1 %v1747_v0 }
 0x3b2   :  { %v586_v62 = vpop.f32.mrf.mxu1  ;;  %v626_v63 = vpop.f32.mrf.mxu0 }
 0x3b3   :  { %v675_v5 = vadd.f32 %v674_v61, %v586_v62  ;;  %v683_v17 = vadd.f32 %v682_v12, %v626_v63  ;;  %v840_v63 = vunpack.c.l.bf16 %v839_v60 }
 0x3b4   :  { %v1502_v9 = vpop.f32.mrf.mxu1  ;;  %v1510_v10 = vpop.f32.mrf.mxu0 }
 0x3b5   :  { %v676_v11 = vmul.f32 0.5, %v675_v5  ;;  %v684_v20 = vmul.f32 0.5, %v683_v17 }
 0x3b6   :  { %v589_v13 = vpop.f32.mrf.mxu1  ;;  %v629_v14 = vpop.f32.mrf.mxu0 }
 0x3b7   :  { %1647 = vtanh.f32 %v676_v11 }
 0x3b8   :  { %v1503_v15 = vpop.f32.mrf.mxu1  ;;  %v1511_v16 = vpop.f32.mrf.mxu0  ;;  %1649 = vtanh.f32 %v684_v20 }
 0x3ba   :  { %v666_v18 = vpop.f32.mrf.mxu1 }
 0x3bc   :  { %v1518_v19 = vpop.f32.mrf.mxu1 }
 0x3be   :  { %v669_v21 = vpop.f32.mrf.mxu1 }
 0x3c0   :  { %v1519_v22 = vpop.f32.mrf.mxu1 }
 0x3c1   :  { %v981_v22 = vld [vmem:[#allocation4 + $0xd] sm:$0x1] }
 0x3c4   :  { %v1648_v23 = vpop.eup %1647 }
 0x3c5   :  { %v678_v25 = vadd.f32 1.0, %v1648_v23  ;;  %v1650_v30 = vpop.eup %1649 }
 0x3c6   :  { %v686_v31 = vadd.f32 1.0, %v1650_v30 }
 0x3c7   :  { %v679_v26 = vmul.f32 0.5, %v678_v25 }
 0x3c8   :  { %v687_v32 = vmul.f32 0.5, %v686_v31 }
 0x3c9   :  { %v691_v28 = vmul.f32 %v679_v26, %v666_v18  ;;  %v973_v18 = vld [vmem:[#allocation4 + $0x5] sm:$0x1] }
 0x3ca   :  { %v694_v33 = vsub.f32 1.0, %v687_v32  ;;  %v696_v35 = vmul.f32 %v687_v32, %v547_v58  ;;  %v974_v19 = vunpack.c.l.bf16 %v973_v18 }
 0x3cb   :  { %v692_v29 = vadd.f32 %v691_v28, %v690_v27  ;;  %v982_v27 = vunpack.c.l.bf16 %v981_v22 }
 0x3cd   :  { %1651 = vtanh.f32 %v692_v29 }
 0x3da   :  { %v1652_v34 = vpop.eup %1651 }
 0x3db   :  { %v695_v36 = vmul.f32 %v1652_v34, %v694_v33 }
 0x3dd   :  { %v697_v37 = vadd.f32 %v696_v35, %v695_v36 }
 0x3df   :  { %v698_v38 = vpack.c.bf16 %v697_v37, %v697_v37 }
 0x3e1   :  { %1525 = vmatmul.mubr.msk.bf16.vlgmr.msra.gmra.mxu0 %vm75_vm2, %v698_v38  ;;  %1533 = vmatmul.mubr.msk.bf16.vlgmr.msra.gmra.mxu1 %vm75_vm2, %v698_v38 }
 0x3e2   :  { %1537 = vmatpush3.bf16.msra.mxu0 %v1796_v7  ;;  %1540 = vmatprep.mubr.msk.bf16.mxu0 %vm1748_vm1, %v1747_v0 }
 0x3e3   :  { %1538 = vmatprep.subr.bf16.mxu0 %v1747_v0  ;;  %1545 = vmatpush3.bf16.msra.mxu1 %v1779_v1 }
 0x3e4   :  { %1546 = vmatprep.subr.bf16.mxu1 %v1747_v0  ;;  %1548 = vmatprep.mubr.msk.bf16.mxu1 %vm1748_vm1, %v1747_v0 }
 0x3e6   :  { %1539 = vmatpush3.bf16.msra.mxu0 %v1802_v8 }
 0x3e7   :  { %1552 = vmatprep.subr.bf16.mxu0 %v1747_v0  ;;  %1547 = vmatpush3.bf16.msra.mxu1 %v1781_v2 }
 0x3e8   :  { %1560 = vmatprep.subr.bf16.mxu1 %v1747_v0 }
 0x3e9   :  { %1541 = vmatmul.mubr.msk.bf16.vlgmr.msra.gmra.mxu0 %vm75_vm2, %v698_v38 }
 0x3ea   :  { %1553 = vmatpush3.bf16.msra.mxu0 %v1787_v4  ;;  %1556 = vmatprep.mubr.msk.bf16.mxu0 %vm1748_vm1, %v1747_v0 }
 0x3eb   :  { %1554 = vmatprep.subr.bf16.mxu0 %v1747_v0 }
 0x3ee   :  { %1555 = vmatpush3.bf16.msra.mxu0 %v1792_v6 }
 0x3ef   :  { %1568 = vmatprep.subr.bf16.mxu0 %v1747_v0 }
 0x4a1   :  { %v736_v41 = vpop.f32.mrf.mxu0  ;;  %v776_v42 = vpop.f32.mrf.mxu1 }
 0x4a2   :  { %v825_v44 = vadd.f32 %v824_v40, %v736_v41  ;;  %v833_v53 = vadd.f32 %v832_v48, %v776_v42  ;;  %v990_v42 = vunpack.c.l.bf16 %v989_v39 }
 0x4a3   :  { %v1526_v45 = vpop.f32.mrf.mxu0  ;;  %v1534_v46 = vpop.f32.mrf.mxu1 }
 0x4a4   :  { %v826_v47 = vmul.f32 0.5, %v825_v44  ;;  %v834_v56 = vmul.f32 0.5, %v833_v53 }
 0x4a5   :  { %v739_v49 = vpop.f32.mrf.mxu0  ;;  %v779_v50 = vpop.f32.mrf.mxu1 }
 0x4a6   :  { %1653 = vtanh.f32 %v826_v47 }
 0x4a7   :  { %v1527_v51 = vpop.f32.mrf.mxu0  ;;  %v1535_v52 = vpop.f32.mrf.mxu1  ;;  %1655 = vtanh.f32 %v834_v56 }
 0x4a9   :  { %v816_v54 = vpop.f32.mrf.mxu0 }
 0x4ab   :  { %v1542_v55 = vpop.f32.mrf.mxu0 }
 0x4ad   :  { %v819_v57 = vpop.f32.mrf.mxu0 }
 0x4ae   :  { %v1131_v57 = vld [vmem:[#allocation4 + $0xe] sm:$0x1] }
 0x4af   :  { %v1543_v58 = vpop.f32.mrf.mxu0 }
 0x4b3   :  { %v1654_v59 = vpop.eup %1653 }
 0x4b4   :  { %v828_v61 = vadd.f32 1.0, %v1654_v59  ;;  %v1656_v9 = vpop.eup %1655 }
 0x4b5   :  { %v836_v10 = vadd.f32 1.0, %v1656_v9 }
 0x4b6   :  { %v829_v62 = vmul.f32 0.5, %v828_v61  ;;  %v1132_v61 = vunpack.c.l.bf16 %v1131_v57 }
 0x4b7   :  { %v837_v11 = vmul.f32 0.5, %v836_v10 }
 0x4b8   :  { %v841_v3 = vmul.f32 %v829_v62, %v816_v54 }
 0x4b9   :  { %v844_v12 = vsub.f32 1.0, %v837_v11  ;;  %v846_v14 = vmul.f32 %v837_v11, %v697_v37 }
 0x4ba   :  { %v842_v5 = vadd.f32 %v841_v3, %v840_v63 }
 0x4bc   :  { %1657 = vtanh.f32 %v842_v5 }
 0x4c9   :  { %v1658_v13 = vpop.eup %1657 }
 0x4ca   :  { %v845_v15 = vmul.f32 %v1658_v13, %v844_v12 }
 0x4cc   :  { %v847_v16 = vadd.f32 %v846_v14, %v845_v15  ;;  %v1139_v14 = vld [vmem:[#allocation4 + $0x16] sm:$0x1] }
 0x4ce   :  { %v848_v17 = vpack.c.bf16 %v847_v16, %v847_v16 }
 0x4d0   :  { %1549 = vmatmul.mubr.msk.bf16.vlgmr.msra.gmra.mxu1 %vm75_vm2, %v848_v17  ;;  %1557 = vmatmul.mubr.msk.bf16.vlgmr.msra.gmra.mxu0 %vm75_vm2, %v848_v17 }
 0x4d1   :  { %1561 = vmatpush3.bf16.msra.mxu1 %v1796_v7  ;;  %1564 = vmatprep.mubr.msk.bf16.mxu1 %vm1748_vm1, %v1747_v0 }
 0x4d2   :  { %1562 = vmatprep.subr.bf16.mxu1 %v1747_v0  ;;  %1569 = vmatpush3.bf16.msra.mxu0 %v1779_v1 }
 0x4d3   :  { %1570 = vmatprep.subr.bf16.mxu0 %v1747_v0  ;;  %1572 = vmatprep.mubr.msk.bf16.mxu0 %vm1748_vm1, %v1747_v0 }
 0x4d5   :  { %1563 = vmatpush3.bf16.msra.mxu1 %v1802_v8 }
 0x4d6   :  { %1576 = vmatprep.subr.bf16.mxu1 %v1747_v0  ;;  %1571 = vmatpush3.bf16.msra.mxu0 %v1781_v2 }
 0x4d7   :  { %1584 = vmatprep.subr.bf16.mxu0 %v1747_v0 }
 0x4d8   :  { %1565 = vmatmul.mubr.msk.bf16.vlgmr.msra.gmra.mxu1 %vm75_vm2, %v848_v17  ;;  %v1140_v17 = vunpack.c.l.bf16 %v1139_v14 }
 0x4d9   :  { %1577 = vmatpush3.bf16.msra.mxu1 %v1787_v4  ;;  %1580 = vmatprep.mubr.msk.bf16.mxu1 %vm1748_vm1, %v1747_v0 }
 0x4da   :  { %1578 = vmatprep.subr.bf16.mxu1 %v1747_v0 }
 0x4dd   :  { %1579 = vmatpush3.bf16.msra.mxu1 %v1792_v6 }
 0x4de   :  { %1592 = vmatprep.subr.bf16.mxu1 %v1747_v0 }
 0x590   :  { %v886_v20 = vpop.f32.mrf.mxu1  ;;  %v926_v21 = vpop.f32.mrf.mxu0 }
 0x591   :  { %v975_v23 = vadd.f32 %v974_v19, %v886_v20  ;;  %v983_v32 = vadd.f32 %v982_v27, %v926_v21 }
 0x592   :  { %v1550_v24 = vpop.f32.mrf.mxu1  ;;  %v1558_v25 = vpop.f32.mrf.mxu0 }
 0x593   :  { %v976_v26 = vmul.f32 0.5, %v975_v23  ;;  %v984_v35 = vmul.f32 0.5, %v983_v32 }
 0x594   :  { %v889_v28 = vpop.f32.mrf.mxu1  ;;  %v929_v29 = vpop.f32.mrf.mxu0 }
 0x595   :  { %1659 = vtanh.f32 %v976_v26  ;;  %v1273_v29 = vld [vmem:[#allocation4 + $0x7] sm:$0x1] }
 0x596   :  { %v1551_v30 = vpop.f32.mrf.mxu1  ;;  %v1559_v31 = vpop.f32.mrf.mxu0  ;;  %1661 = vtanh.f32 %v984_v35 }
 0x597   :  { %v1274_v30 = vunpack.c.l.bf16 %v1273_v29 }
 0x598   :  { %v966_v33 = vpop.f32.mrf.mxu1 }
 0x59a   :  { %v1566_v34 = vpop.f32.mrf.mxu1 }
 0x59c   :  { %v969_v36 = vpop.f32.mrf.mxu1 }
 0x59e   :  { %v1567_v37 = vpop.f32.mrf.mxu1 }
 0x5a2   :  { %v1660_v38 = vpop.eup %1659 }
 0x5a3   :  { %v978_v40 = vadd.f32 1.0, %v1660_v38  ;;  %v1662_v45 = vpop.eup %1661 }
 0x5a4   :  { %v986_v46 = vadd.f32 1.0, %v1662_v45 }
 0x5a5   :  { %v979_v41 = vmul.f32 0.5, %v978_v40 }
 0x5a6   :  { %v987_v47 = vmul.f32 0.5, %v986_v46 }
 0x5a7   :  { %v991_v43 = vmul.f32 %v979_v41, %v966_v33  ;;  %v1281_v33 = vld [vmem:[#allocation4 + $0xf] sm:$0x1] }
 0x5a8   :  { %v994_v48 = vsub.f32 1.0, %v987_v47  ;;  %v996_v50 = vmul.f32 %v987_v47, %v847_v16  ;;  %v1282_v38 = vunpack.c.l.bf16 %v1281_v33  ;;  %v1289_v47 = vld [vmem:[#allocation4 + $0x17] sm:$0x1] }
 0x5a9   :  { %v992_v44 = vadd.f32 %v991_v43, %v990_v42 }
 0x5ab   :  { %1663 = vtanh.f32 %v992_v44 }
 0x5b8   :  { %v1664_v49 = vpop.eup %1663 }
 0x5b9   :  { %v995_v51 = vmul.f32 %v1664_v49, %v994_v48 }
 0x5bb   :  { %v997_v52 = vadd.f32 %v996_v50, %v995_v51  ;;  %v1290_v50 = vunpack.c.l.bf16 %v1289_v47 }
 0x5bd   :  { %v998_v53 = vpack.c.bf16 %v997_v52, %v997_v52 }
 0x5bf   :  { %1573 = vmatmul.mubr.msk.bf16.vlgmr.msra.gmra.mxu0 %vm75_vm2, %v998_v53  ;;  %1581 = vmatmul.mubr.msk.bf16.vlgmr.msra.gmra.mxu1 %vm75_vm2, %v998_v53 }
 0x5c0   :  { %1585 = vmatpush3.bf16.msra.mxu0 %v1796_v7  ;;  %1588 = vmatprep.mubr.msk.bf16.mxu0 %vm1748_vm1, %v1747_v0 }
 0x5c1   :  { %1586 = vmatprep.subr.bf16.mxu0 %v1747_v0  ;;  %1593 = vmatpush3.bf16.msra.mxu1 %v1779_v1  ;;  %v1123_v1 = vld [vmem:[#allocation4 + $0x6] sm:$0x1] }
 0x5c2   :  { %1594 = vmatprep.subr.bf16.mxu1 %v1747_v0  ;;  %1596 = vmatprep.mubr.msk.bf16.mxu1 %vm1748_vm1, %v1747_v0  ;;  %v1124_v54 = vunpack.c.l.bf16 %v1123_v1 }
 0x5c4   :  { %1587 = vmatpush3.bf16.msra.mxu0 %v1802_v8 }
 0x5c5   :  { %1600 = vmatprep.subr.bf16.mxu0 %v1747_v0  ;;  %1595 = vmatpush3.bf16.msra.mxu1 %v1781_v2 }
 0x5c6   :  { %1608 = vmatprep.subr.bf16.mxu1 %v1747_v0 }
 0x5c7   :  { %1589 = vmatmul.mubr.msk.bf16.vlgmr.msra.gmra.mxu0 %vm75_vm2, %v998_v53 }
 0x5c8   :  { %1601 = vmatpush3.bf16.msra.mxu0 %v1787_v4  ;;  %1604 = vmatprep.mubr.msk.bf16.mxu0 %vm1748_vm1, %v1747_v0 }
 0x5c9   :  { %1602 = vmatprep.subr.bf16.mxu0 %v1747_v0 }
 0x5cc   :  { %1603 = vmatpush3.bf16.msra.mxu0 %v1792_v6 }
 0x67f   :  { %v1036_v55 = vpop.f32.mrf.mxu0  ;;  %v1076_v56 = vpop.f32.mrf.mxu1 }
 0x680   :  { %v1125_v58 = vadd.f32 %v1124_v54, %v1036_v55  ;;  %v1133_v5 = vadd.f32 %v1132_v61, %v1076_v56 }
 0x681   :  { %v1574_v2 = vpop.f32.mrf.mxu0  ;;  %v1582_v59 = vpop.f32.mrf.mxu1 }
 0x682   :  { %v1126_v60 = vmul.f32 0.5, %v1125_v58  ;;  %v1134_v11 = vmul.f32 0.5, %v1133_v5 }
 0x683   :  { %v1039_v62 = vpop.f32.mrf.mxu0  ;;  %v1079_v63 = vpop.f32.mrf.mxu1 }
 0x684   :  { %1665 = vtanh.f32 %v1126_v60 }
 0x685   :  { %v1575_v4 = vpop.f32.mrf.mxu0  ;;  %v1583_v3 = vpop.f32.mrf.mxu1  ;;  %1667 = vtanh.f32 %v1134_v11 }
 0x687   :  { %v1116_v9 = vpop.f32.mrf.mxu0 }
 0x689   :  { %v1590_v10 = vpop.f32.mrf.mxu0 }
 0x68b   :  { %v1119_v6 = vpop.f32.mrf.mxu0 }
 0x68d   :  { %v1591_v12 = vpop.f32.mrf.mxu0 }
 0x691   :  { %v1666_v13 = vpop.eup %1665 }
 0x692   :  { %v1128_v15 = vadd.f32 1.0, %v1666_v13  ;;  %v1668_v20 = vpop.eup %1667 }
 0x693   :  { %v1136_v21 = vadd.f32 1.0, %v1668_v20 }
 0x694   :  { %v1129_v16 = vmul.f32 0.5, %v1128_v15 }
 0x695   :  { %v1137_v22 = vmul.f32 0.5, %v1136_v21 }
 0x696   :  { %v1141_v18 = vmul.f32 %v1129_v16, %v1116_v9 }
 0x697   :  { %v1144_v23 = vsub.f32 1.0, %v1137_v22  ;;  %v1146_v25 = vmul.f32 %v1137_v22, %v997_v52 }
 0x698   :  { %v1142_v19 = vadd.f32 %v1141_v18, %v1140_v17 }
 0x69a   :  { %1669 = vtanh.f32 %v1142_v19 }
 0x6a7   :  { %v1670_v24 = vpop.eup %1669 }
 0x6a8   :  { %v1145_v26 = vmul.f32 %v1670_v24, %v1144_v23 }
 0x6aa   :  { %v1147_v27 = vadd.f32 %v1146_v25, %v1145_v26 }
 0x6ac   :  { %v1148_v28 = vpack.c.bf16 %v1147_v27, %v1147_v27 }
 0x6ae   :  { %1597 = vmatmul.mubr.msk.bf16.vlgmr.msra.gmra.mxu1 %vm75_vm2, %v1148_v28  ;;  %1605 = vmatmul.mubr.msk.bf16.vlgmr.msra.gmra.mxu0 %vm75_vm2, %v1148_v28 }
 0x6af   :  { %1609 = vmatpush3.bf16.msra.mxu1 %v1796_v7  ;;  %1612 = vmatprep.mubr.msk.bf16.mxu1 %vm1748_vm1, %v1747_v0 }
 0x6b0   :  { %1610 = vmatprep.subr.bf16.mxu1 %v1747_v0 }
 0x6b3   :  { %1611 = vmatpush3.bf16.msra.mxu1 %v1802_v8 }
 0x6b6   :  { %1613 = vmatmul.mubr.msk.bf16.vlgmr.msra.gmra.mxu1 %vm75_vm2, %v1148_v28 }
 0x76e   :  { %v1186_v31 = vpop.f32.mrf.mxu1  ;;  %v1226_v32 = vpop.f32.mrf.mxu0 }
 0x76f   :  { %v1275_v34 = vadd.f32 %v1274_v30, %v1186_v31  ;;  %v1283_v0 = vadd.f32 %v1282_v38, %v1226_v32 }
 0x770   :  { %v1598_v35 = vpop.f32.mrf.mxu1  ;;  %v1606_v36 = vpop.f32.mrf.mxu0 }
 0x771   :  { %v1276_v37 = vmul.f32 0.5, %v1275_v34  ;;  %v1284_v43 = vmul.f32 0.5, %v1283_v0 }
 0x772   :  { %v1189_v7 = vpop.f32.mrf.mxu1  ;;  %v1229_v39 = vpop.f32.mrf.mxu0 }
 0x773   :  { %1671 = vtanh.f32 %v1276_v37 }
 0x774   :  { %v1599_v40 = vpop.f32.mrf.mxu1  ;;  %v1607_v41 = vpop.f32.mrf.mxu0  ;;  %1673 = vtanh.f32 %v1284_v43 }
 0x776   :  { %v1266_v42 = vpop.f32.mrf.mxu1 }
 0x778   :  { %v1614_v8 = vpop.f32.mrf.mxu1 }
 0x77a   :  { %v1269_v44 = vpop.f32.mrf.mxu1 }
 0x77c   :  { %v1615_v45 = vpop.f32.mrf.mxu1 }
 0x780   :  { %v1672_v46 = vpop.eup %1671 }
 0x781   :  { %v1278_v48 = vadd.f32 1.0, %v1672_v46  ;;  %v1674_v53 = vpop.eup %1673 }
 0x782   :  { %v1286_v1 = vadd.f32 1.0, %v1674_v53 }
 0x783   :  { %v1279_v49 = vmul.f32 0.5, %v1278_v48 }
 0x784   :  { %v1287_v54 = vmul.f32 0.5, %v1286_v1 }
 0x785   :  { %v1291_v51 = vmul.f32 %v1279_v49, %v1266_v42 }
 0x786   :  { %v1294_v55 = vsub.f32 1.0, %v1287_v54  ;;  %v1296_v57 = vmul.f32 %v1287_v54, %v1147_v27 }
 0x787   :  { %v1292_v52 = vadd.f32 %v1291_v51, %v1290_v50 }
 0x789   :  { %1675 = vtanh.f32 %v1292_v52 }
 0x796   :  { %v1676_v56 = vpop.eup %1675 }
 0x797   :  { %v1295_v58 = vmul.f32 %v1676_v56, %v1294_v55 }
 0x799   :  { %v1297_v2 = vadd.f32 %v1296_v57, %v1295_v58 }
 0x79b   :  { %1299 = vst.msk [vmem:[#allocation7] sm:$0x3] %vm45_vm0, %v1297_v2 }
 0x79c   :  { %1728 = shalt.err (!%p1725_p0)
}
 0x79d   :  { %1309 = dma.vmem_to_hbm [thread:$0]  %s1307_s1, 32, %s1964_s2, [#allocation6]  }
 0x79e   :  { %1741 = dma.done.wait [#allocation6], 32  }
 0x79f   :  { %1742 = vsyncadd [#allocation6], 4294967264 }
 0x7a0   :  { %1313 = vsyncpa [#allocation5], 1 }
 0x7a1   :  { %1314 = vsyncpa [#allocation6], 1 }
 0x7a2   :  { %1315 = vsyncmov [#allocation3] }
 0x7a5   :  { %s1316_s24 = vpop.sfrf %1315 }
 0x7a6   :  { %p1351_p1 = scmp.ne.s32.totalorder %s1316_s24, 0 }
 0x7a8   :  { %1320 = shalt.err (%p1351_p1)  }

</bundles_post_ra>
